<compile_context>
chip_gen: v7x
topology: tpu7x:2x2x1
jax: 0.10.0
libtpu: 0.0.40
codegen_flags: <defaults>
</compile_context>

<pallas_src>
import functools
import math

import jax
import jax.numpy as jnp
from jax.experimental import pallas as pl
from jax.experimental.pallas import tpu as pltpu


def _round_up(x, m):
    return ((x + m - 1) // m) * m


def _layernorm_padded(x, w, b, c_real, eps=1e-5):
    """LayerNorm over the first c_real channels of a zero-padded (R, Cp) slab.

    Padded lanes of x, w, b are zero, so padded output lanes stay zero; using
    E[x^2]-mu^2 means no lane mask is needed (padded lanes contribute 0 to both
    sums and the real channel count is used for the statistics).
    """
    inv_c = jnp.float32(1.0 / c_real)
    mu = jnp.sum(x, axis=-1, keepdims=True) * inv_c
    ex2 = jnp.sum(x * x, axis=-1, keepdims=True) * inv_c
    var = ex2 - mu * mu
    return (x - mu) * jax.lax.rsqrt(var + eps) * w + b


def block_kernel(x_ref, ln1w_ref, ln1b_ref, wqkv_ref, wproj_ref, bproj_ref,
                 ln2w_ref, ln2b_ref, b2_ref, w1_hbm, b1_hbm, w2_hbm,
                 o_ref, attn_cat, mlp_acc,
                 *, num_heads, c_real, n_real, bb, mlp_grid, mlp_chunk):
    f32 = jnp.float32
    bf16 = jnp.bfloat16

    x = x_ref[...].astype(f32)                  # (R, Cp) lane-dense rows
    R, Cp = x.shape
    Np = R // bb                                # sublane-padded tokens per batch elem
    dhp = Cp // num_heads                       # padded per-head width

    # ---- norm1 + fused qkv projection (one MXU matmul, 1/sqrt(dh) folded in wq) ----
    h1b = _layernorm_padded(x, ln1w_ref[0], ln1b_ref[0], c_real).astype(bf16)
    qkv = jnp.dot(h1b, wqkv_ref[...], preferred_element_type=f32).astype(bf16)
    q = qkv[:, :Cp]                             # cast to bf16 once, reused per head
    k = qkv[:, Cp:2 * Cp]
    v = qkv[:, 2 * Cp:]

    key_ok = None
    if Np != n_real:                            # static branch: mask padded key tokens
        key_ok = jax.lax.broadcasted_iota(jnp.int32, (Np, Np), 1) < n_real

    # Per-batch (N, N) attention -> no block-diagonal (R, R) scores or bias.
    # TODO(synk): for num_heads >= 12 (v7x) replace this static unroll with a
    # lax.fori_loop over pl.ds(head*dhp, dhp) slices to bound code size.
    for bi in range(bb):
        rsl = slice(bi * Np, (bi + 1) * Np)
        for hd in range(num_heads):
            csl = slice(hd * dhp, (hd + 1) * dhp)
            qh = q[rsl, csl]                    # bf16 (Np, dhp)
            kh = k[rsl, csl]
            vh = v[rsl, csl]
            # q @ k^T without materializing a transpose (NT dot); scale already in wq.
            s = jax.lax.dot_general(qh, kh, (((1,), (1,)), ((), ())),
                                    preferred_element_type=f32)
            if key_ok is not None:
                s = jnp.where(key_ok, s, f32(-1e30))
            s = s - jnp.max(s, axis=-1, keepdims=True)
            p = jnp.exp(s)
            denom = jnp.sum(p, axis=-1, keepdims=True)
            p = p * pl.reciprocal(denom, approx=True)      # EUP slot, frees the VPU
            oh = jnp.dot(p.astype(bf16), vh, preferred_element_type=f32)
            attn_cat[rsl, csl] = oh.astype(bf16)           # head-blocked concat slab

    # One full-K (R,Cp)x(Cp,Cp) output projection instead of num_heads K=dhp matmuls.
    attn = jnp.dot(attn_cat[...], wproj_ref[...], preferred_element_type=f32)
    x = x + attn + bproj_ref[0]                 # residual 1 (f32)

    # ---- norm2 + MLP (exact GELU); w1/b1/w2 streamed over the hidden dimension ----
    h2b = _layernorm_padded(x, ln2w_ref[0], ln2b_ref[0], c_real).astype(bf16)
    mlp_acc[...] = jnp.zeros_like(mlp_acc)

    def mlp_chunk_kernel(w1_v, b1_v, w2_v):
        h = jnp.dot(h2b, w1_v[...], preferred_element_type=f32) + b1_v[0]
        h = 0.5 * h * (1.0 + jax.lax.erf(h * f32(1.0 / math.sqrt(2.0))))
        mlp_acc[...] += jnp.dot(h.astype(bf16), w2_v[...],
                                preferred_element_type=f32)

    pltpu.emit_pipeline(
        mlp_chunk_kernel,
        grid=(mlp_grid,),
        in_specs=[pl.BlockSpec((Cp, mlp_chunk), lambda l: (0, l)),
                  pl.BlockSpec((1, mlp_chunk), lambda l: (0, l)),
                  pl.BlockSpec((mlp_chunk, Cp), lambda l: (l, 0))],
    )(w1_hbm, b1_hbm, w2_hbm)

    x = x + mlp_acc[...] + b2_ref[0]            # residual 2 (f32)
    o_ref[...] = x.astype(o_ref.dtype)


def _pick_batch_block(B, n_pad, target_rows=512):
    """Largest divisor bb of B with bb*n_pad <= target, keeping >=2 grid steps."""
    best = 1
    for d in range(1, B + 1):
        if B % d:
            continue
        if d * n_pad > max(target_rows, n_pad):
            continue
        if B > 1 and B // d < 2:
            continue                           # >=2 grid steps -> v7x megacore
        best = max(best, d)
    return best


def _pick_hidden_chunk(Hp, target=512):
    """Largest multiple of 128 that divides Hp and is <= target (Hp % 128 == 0)."""
    best = 128
    for c in range(128, min(Hp, target) + 1, 128):
        if Hp % c == 0:
            best = c
    return best


def _vmem_limit_bytes():
    """Generation-aware VMEM limit: ~75% of per-core VMEM, capped at 96 MiB.

    v7x (64 MiB / TC) -> ~48 MiB; v5e/v6e (128 MiB) -> 96 MiB.
    """
    try:
        cap = int(pltpu.get_tpu_info().vmem_capacity_bytes)
    except Exception:
        cap = 64 * 1024 * 1024
    return max(32 * 1024 * 1024, min((cap * 3) // 4, 96 * 1024 * 1024))


def _prepare_inputs(x, params, num_heads):
    """Pad tokens/channels to (8,128)-friendly sizes; repack weights head-blocked."""
    B, N, C = x.shape
    hidden = params["w1"].shape[1]
    Cp = _round_up(C, 128)
    Hp = _round_up(hidden, 128)
    Np = _round_up(N, 8)                 # sublane-pad tokens instead of inflating bb
    assert C % num_heads == 0 and Cp % num_heads == 0
    dh = C // num_heads
    dhp = Cp // num_heads
    scale = dh ** (-0.5)
    f32, bf16 = jnp.float32, jnp.bfloat16

    x_p = jnp.zeros((B, Np, Cp), f32).at[:, :N, :C].set(x.astype(f32))
    x2d = x_p.reshape(B * Np, Cp)

    def pad_vec(v, n):                   # (1, m) -> (1, n)
        return jnp.zeros((1, n), f32).at[:, :v.shape[-1]].set(v.astype(f32))

    # Fused qkv weight: (Cp, 3*Cp) head-blocked columns; 1/sqrt(dh) folded into q.
    wqkv = params["wqkv"].astype(f32)    # (C, 3C), x @ W layout
    wq, wk, wv = wqkv[:, :C], wqkv[:, C:2 * C], wqkv[:, 2 * C:]
    fused = jnp.zeros((Cp, 3 * Cp), f32)
    for h in range(num_heads):
        src = slice(h * dh, (h + 1) * dh)
        fused = fused.at[:C, h * dhp:h * dhp + dh].set(wq[:, src] * scale)
        fused = fused.at[:C, Cp + h * dhp:Cp + h * dhp + dh].set(wk[:, src])
        fused = fused.at[:C, 2 * Cp + h * dhp:2 * Cp + h * dhp + dh].set(wv[:, src])
    wqkv_p = fused.astype(bf16)

    # Output projection with head-blocked rows (matches the concat scratch layout).
    wproj = params["wproj"].astype(f32)  # (C, C)
    wp = jnp.zeros((Cp, Cp), f32)
    for h in range(num_heads):
        wp = wp.at[h * dhp:h * dhp + dh, :C].set(wproj[h * dh:(h + 1) * dh, :])
    wproj_p = wp.astype(bf16)

    w1 = jnp.zeros((Cp, Hp), f32).at[:C, :hidden].set(
        params["w1"].astype(f32)).astype(bf16)
    w2 = jnp.zeros((Hp, Cp), f32).at[:hidden, :C].set(
        params["w2"].astype(f32)).astype(bf16)

    prep = dict(
        x2d=x2d,
        ln1_w=pad_vec(params["ln1_w"], Cp), ln1_b=pad_vec(params["ln1_b"], Cp),
        wqkv=wqkv_p, wproj=wproj_p, bproj=pad_vec(params["bproj"], Cp),
        ln2_w=pad_vec(params["ln2_w"], Cp), ln2_b=pad_vec(params["ln2_b"], Cp),
        w1=w1, b1=pad_vec(params["b1"], Hp), w2=w2, b2=pad_vec(params["b2"], Cp),
    )
    return prep, (B, N, Np, C, Cp, hidden, Hp)


def vit_block(x, params, num_heads, target_rows=512):
    prep, (B, N, Np, C, Cp, hidden, Hp) = _prepare_inputs(x, params, num_heads)
    bb = _pick_batch_block(B, Np, target_rows)
    R = bb * Np
    grid = (B // bb,)
    mlp_chunk = _pick_hidden_chunk(Hp)
    mlp_grid = Hp // mlp_chunk

    consts = [prep["ln1_w"], prep["ln1_b"], prep["wqkv"], prep["wproj"],
              prep["bproj"], prep["ln2_w"], prep["ln2_b"], prep["b2"]]
    hbm_ops = [prep["w1"], prep["b1"], prep["w2"]]       # streamed over hidden dim

    def const_spec(a):
        nd = a.ndim
        # Constant index_map -> single buffer: no double-buffered weight copies.
        return pl.BlockSpec(a.shape, lambda i, _nd=nd: (0,) * _nd,
                            pipeline_mode=pl.Buffered(1))

    # Advisory cost estimate for the XLA scheduler (padded sizes = actual MXU work).
    flops = B * Np * (8 * Cp * Cp + 4 * Np * Cp + 4 * Cp * Hp)
    transcendentals = B * (num_heads * Np * Np + Np * Hp)
    in_arrays = [prep["x2d"]] + consts + hbm_ops
    bytes_accessed = (sum(int(a.size) * a.dtype.itemsize for a in in_arrays)
                      + B * Np * Cp * x.dtype.itemsize)
    cost = pl.CostEstimate(flops=int(flops), transcendentals=int(transcendentals),
                           bytes_accessed=int(bytes_accessed))

    kernel = functools.partial(block_kernel, num_heads=num_heads, c_real=C,
                               n_real=N, bb=bb, mlp_grid=mlp_grid,
                               mlp_chunk=mlp_chunk)

    out2d = pl.pallas_call(
        kernel,
        out_shape=jax.ShapeDtypeStruct((B * Np, Cp), x.dtype),
        grid=grid,
        in_specs=([pl.BlockSpec((R, Cp), lambda i: (i, 0))]        # row tile of x
                  + [const_spec(a) for a in consts]
                  + [pl.BlockSpec(memory_space=pl.ANY)] * len(hbm_ops)),
        out_specs=pl.BlockSpec((R, Cp), lambda i: (i, 0)),         # lane-dense output
        scratch_shapes=[pltpu.VMEM((R, Cp), jnp.bfloat16),         # head-blocked concat
                        pltpu.VMEM((R, Cp), jnp.float32)],         # MLP accumulator
        compiler_params=pltpu.CompilerParams(
            dimension_semantics=("parallel",),   # >=2 grid steps -> v7x both TCs
            vmem_limit_bytes=_vmem_limit_bytes()),
        cost_estimate=cost,
    )(prep["x2d"], *consts, *hbm_ops)

    out = out2d.reshape(B, Np, Cp)
    if Np != N or Cp != C:
        out = out[:, :N, :C]
    return out


def vit_block_ref(x, p, num_heads):
    """Pure-JAX f32 reference (matches the PyTorch Block forward)."""
    x = x.astype(jnp.float32)
    B, N, C = x.shape
    dh = C // num_heads
    scale = dh ** (-0.5)

    def ln(v, w, b):
        mu = jnp.mean(v, -1, keepdims=True)
        var = jnp.mean((v - mu) ** 2, -1, keepdims=True)
        return (v - mu) / jnp.sqrt(var + 1e-5) * w + b

    h = ln(x, p["ln1_w"][0], p["ln1_b"][0])
    qkv = h @ p["wqkv"]                                     # (B, N, 3C)
    qkv = qkv.reshape(B, N, 3, num_heads, dh).transpose(2, 0, 3, 1, 4)
    q, k, v = qkv[0], qkv[1], qkv[2]                        # (B, H, N, dh)
    a = jnp.einsum("bhnd,bhmd->bhnm", q, k) * scale
    a = jax.nn.softmax(a, axis=-1)
    o = jnp.einsum("bhnm,bhmd->bhnd", a, v).transpose(0, 2, 1, 3).reshape(B, N, C)
    o = o @ p["wproj"] + p["bproj"][0]
    x = x + o
    h2 = ln(x, p["ln2_w"][0], p["ln2_b"][0])
    h2 = h2 @ p["w1"] + p["b1"][0]
    h2 = 0.5 * h2 * (1.0 + jax.lax.erf(h2 / jnp.sqrt(2.0)))
    h2 = h2 @ p["w2"] + p["b2"][0]
    return x + h2


if __name__ == "__main__":
    B, N, dim = 2, 8, 32
    num_heads = 4
    mlp_ratio = 4.0
    hidden = int(dim * mlp_ratio)

    key = jax.random.PRNGKey(0)
    keys = jax.random.split(key, 8)

    params = {
        "ln1_w": jnp.ones((1, dim), jnp.float32),
        "ln1_b": jnp.zeros((1, dim), jnp.float32),
        "wqkv": 0.02 * jax.random.normal(keys[0], (dim, 3 * dim), jnp.float32),
        "wproj": 0.02 * jax.random.normal(keys[1], (dim, dim), jnp.float32),
        "bproj": 0.02 * jax.random.normal(keys[2], (1, dim), jnp.float32),
        "ln2_w": jnp.ones((1, dim), jnp.float32),
        "ln2_b": jnp.zeros((1, dim), jnp.float32),
        "w1": 0.02 * jax.random.normal(keys[3], (dim, hidden), jnp.float32),
        "b1": 0.02 * jax.random.normal(keys[4], (1, hidden), jnp.float32),
        "w2": 0.02 * jax.random.normal(keys[5], (hidden, dim), jnp.float32),
        "b2": 0.02 * jax.random.normal(keys[6], (1, dim), jnp.float32),
    }

    x = jax.random.normal(keys[7], (B, N, dim), jnp.float32)

    out = jax.block_until_ready(vit_block(x, params, num_heads))
    ref = vit_block_ref(x, params, num_heads)

    assert out.shape == (B, N, dim)
    err = float(jnp.max(jnp.abs(out - ref)))
    # bf16 MXU operands + approx reciprocal => slightly looser tolerance than pure f32.
    assert err < 2e-2, f"max abs err {err}"

    print("KERNEL_OK")
</pallas_src>

<mosaic_0001>
module attributes {stable_mosaic.version = 11 : i64} {
  func.func @block_kernel(%arg0: i32, %arg1: memref<8x128xf32, #tpu.memory_space<vmem>>, %arg2: memref<1x128xf32, #tpu.memory_space<vmem>>, %arg3: memref<1x128xf32, #tpu.memory_space<vmem>>, %arg4: memref<128x384xbf16, #tpu.memory_space<vmem>>, %arg5: memref<128x128xbf16, #tpu.memory_space<vmem>>, %arg6: memref<1x128xf32, #tpu.memory_space<vmem>>, %arg7: memref<1x128xf32, #tpu.memory_space<vmem>>, %arg8: memref<1x128xf32, #tpu.memory_space<vmem>>, %arg9: memref<1x128xf32, #tpu.memory_space<vmem>>, %arg10: memref<128x128xbf16, #tpu.memory_space<any>>, %arg11: memref<1x128xf32, #tpu.memory_space<any>>, %arg12: memref<128x128xbf16, #tpu.memory_space<any>>, %arg13: memref<8x128xf32, #tpu.memory_space<vmem>>, %arg14: memref<8x128xbf16, #tpu.memory_space<vmem>>, %arg15: memref<8x128xf32, #tpu.memory_space<vmem>>) attributes {dimension_semantics = [#tpu.dimension_semantics<parallel>], iteration_bounds = array<i64: 2>, scalar_prefetch = 0 : i64, scratch_operands = 2 : i64, tpu.core_type = #tpu.core_type<tc>, window_params = [{transform_indices = @transform_0, window_bounds = array<i64: 8, 128>}, {pipeline_mode = #tpu.pipeline_mode<synchronous>, transform_indices = @transform_1, window_bounds = array<i64: 1, 128>}, {pipeline_mode = #tpu.pipeline_mode<synchronous>, transform_indices = @transform_2, window_bounds = array<i64: 1, 128>}, {pipeline_mode = #tpu.pipeline_mode<synchronous>, transform_indices = @transform_3, window_bounds = array<i64: 128, 384>}, {pipeline_mode = #tpu.pipeline_mode<synchronous>, transform_indices = @transform_4, window_bounds = array<i64: 128, 128>}, {pipeline_mode = #tpu.pipeline_mode<synchronous>, transform_indices = @transform_5, window_bounds = array<i64: 1, 128>}, {pipeline_mode = #tpu.pipeline_mode<synchronous>, transform_indices = @transform_6, window_bounds = array<i64: 1, 128>}, {pipeline_mode = #tpu.pipeline_mode<synchronous>, transform_indices = @transform_7, window_bounds = array<i64: 1, 128>}, {pipeline_mode = #tpu.pipeline_mode<synchronous>, transform_indices = @transform_8, window_bounds = array<i64: 1, 128>}, {}, {}, {}, {transform_indices = @transform_12, window_bounds = array<i64: 8, 128>}]} {
    %c0 = arith.constant 0 : index
    %c0_0 = arith.constant 0 : index
    %0 = vector.load %arg1[%c0, %c0_0] : memref<8x128xf32, #tpu.memory_space<vmem>>, vector<8x128xf32>
    %c0_1 = arith.constant 0 : index
    %c0_2 = arith.constant 0 : index
    %1 = vector.load %arg2[%c0_1, %c0_2] : memref<1x128xf32, #tpu.memory_space<vmem>>, vector<1x128xf32>
    %2 = vector.shape_cast %1 : vector<1x128xf32> to vector<128xf32>
    %c0_3 = arith.constant 0 : index
    %c0_4 = arith.constant 0 : index
    %3 = vector.load %arg3[%c0_3, %c0_4] : memref<1x128xf32, #tpu.memory_space<vmem>>, vector<1x128xf32>
    %4 = vector.shape_cast %3 : vector<1x128xf32> to vector<128xf32>
    %cst = arith.constant dense<0.000000e+00> : vector<8xf32>
    %5 = vector.multi_reduction <add>, %0, %cst [1] : vector<8x128xf32> to vector<8xf32>
    %6 = vector.shape_cast %5 : vector<8xf32> to vector<8x1xf32>
    %cst_5 = arith.constant 3.125000e-02 : f32
    %7 = vector.broadcast %cst_5 : f32 to vector<8x1xf32>
    %8 = arith.mulf %6, %7 : vector<8x1xf32>
    %9 = arith.mulf %0, %0 : vector<8x128xf32>
    %cst_6 = arith.constant dense<0.000000e+00> : vector<8xf32>
    %10 = vector.multi_reduction <add>, %9, %cst_6 [1] : vector<8x128xf32> to vector<8xf32>
    %11 = vector.shape_cast %10 : vector<8xf32> to vector<8x1xf32>
    %cst_7 = arith.constant 3.125000e-02 : f32
    %12 = vector.broadcast %cst_7 : f32 to vector<8x1xf32>
    %13 = arith.mulf %11, %12 : vector<8x1xf32>
    %14 = arith.mulf %8, %8 : vector<8x1xf32>
    %15 = arith.subf %13, %14 : vector<8x1xf32>
    %16 = vector.broadcast %8 : vector<8x1xf32> to vector<8x128xf32>
    %17 = arith.subf %0, %16 : vector<8x128xf32>
    %cst_8 = arith.constant 9.99999974E-6 : f32
    %18 = vector.broadcast %cst_8 : f32 to vector<8x1xf32>
    %19 = arith.addf %15, %18 : vector<8x1xf32>
    %20 = math.rsqrt %19 : vector<8x1xf32>
    %21 = vector.broadcast %20 : vector<8x1xf32> to vector<8x128xf32>
    %22 = arith.mulf %17, %21 : vector<8x128xf32>
    %23 = vector.shape_cast %2 : vector<128xf32> to vector<1x128xf32>
    %24 = vector.broadcast %23 : vector<1x128xf32> to vector<8x128xf32>
    %25 = arith.mulf %22, %24 : vector<8x128xf32>
    %26 = vector.shape_cast %4 : vector<128xf32> to vector<1x128xf32>
    %27 = vector.broadcast %26 : vector<1x128xf32> to vector<8x128xf32>
    %28 = arith.addf %25, %27 : vector<8x128xf32>
    %29 = arith.truncf %28 : vector<8x128xf32> to vector<8x128xbf16>
    %c0_9 = arith.constant 0 : index
    %c0_10 = arith.constant 0 : index
    %30 = vector.load %arg4[%c0_9, %c0_10] : memref<128x384xbf16, #tpu.memory_space<vmem>>, vector<128x384xbf16>
    %cst_11 = arith.constant dense<0.000000e+00> : vector<8x384xf32>
    %31 = tpu.matmul %29, %30, %cst_11 {dimension_numbers = #tpu.dot_dimension_numbers<[1], [0], [0], [1], [0, 0, 1, 1], [], []>} : vector<8x128xbf16>, vector<128x384xbf16>, vector<8x384xf32> -> vector<8x384xf32>
    %32 = arith.truncf %31 : vector<8x384xf32> to vector<8x384xbf16>
    %33 = vector.extract_strided_slice %32 {offsets = [0, 0], sizes = [8, 128], strides = [1, 1]} : vector<8x384xbf16> to vector<8x128xbf16>
    %34 = vector.extract_strided_slice %32 {offsets = [0, 128], sizes = [8, 128], strides = [1, 1]} : vector<8x384xbf16> to vector<8x128xbf16>
    %35 = vector.extract_strided_slice %32 {offsets = [0, 256], sizes = [8, 128], strides = [1, 1]} : vector<8x384xbf16> to vector<8x128xbf16>
    %36 = vector.extract_strided_slice %33 {offsets = [0, 0], sizes = [8, 32], strides = [1, 1]} : vector<8x128xbf16> to vector<8x32xbf16>
    %37 = vector.extract_strided_slice %34 {offsets = [0, 0], sizes = [8, 32], strides = [1, 1]} : vector<8x128xbf16> to vector<8x32xbf16>
    %38 = vector.extract_strided_slice %35 {offsets = [0, 0], sizes = [8, 32], strides = [1, 1]} : vector<8x128xbf16> to vector<8x32xbf16>
    %cst_12 = arith.constant dense<0.000000e+00> : vector<8x8xf32>
    %39 = tpu.matmul %36, %37, %cst_12 {dimension_numbers = #tpu.dot_dimension_numbers<[1], [1], [0], [0], [0, 0, 1, 0], [], []>} : vector<8x32xbf16>, vector<8x32xbf16>, vector<8x8xf32> -> vector<8x8xf32>
    %cst_13 = arith.constant dense<0xFF800000> : vector<8xf32>
    %40 = vector.multi_reduction <maximumf>, %39, %cst_13 [1] : vector<8x8xf32> to vector<8xf32>
    %41 = vector.shape_cast %40 : vector<8xf32> to vector<8x1xf32>
    %42 = vector.broadcast %41 : vector<8x1xf32> to vector<8x8xf32>
    %43 = arith.subf %39, %42 : vector<8x8xf32>
    %44 = math.exp %43 : vector<8x8xf32>
    %cst_14 = arith.constant dense<0.000000e+00> : vector<8xf32>
    %45 = vector.multi_reduction <add>, %44, %cst_14 [1] : vector<8x8xf32> to vector<8xf32>
    %46 = vector.shape_cast %45 : vector<8xf32> to vector<8x1xf32>
    %47 = tpu.reciprocal %46 {approx = true} : vector<8x1xf32> -> vector<8x1xf32>
    %48 = vector.broadcast %47 : vector<8x1xf32> to vector<8x8xf32>
    %49 = arith.mulf %44, %48 : vector<8x8xf32>
    %50 = arith.truncf %49 : vector<8x8xf32> to vector<8x8xbf16>
    %cst_15 = arith.constant dense<0.000000e+00> : vector<8x32xf32>
    %51 = tpu.matmul %50, %38, %cst_15 {dimension_numbers = #tpu.dot_dimension_numbers<[1], [0], [0], [1], [0, 0, 1, 1], [], []>} : vector<8x8xbf16>, vector<8x32xbf16>, vector<8x32xf32> -> vector<8x32xf32>
    %52 = arith.truncf %51 : vector<8x32xf32> to vector<8x32xbf16>
    %c0_16 = arith.constant 0 : index
    %c0_17 = arith.constant 0 : index
    %53 = vector.load %arg14[%c0_16, %c0_17] : memref<8x128xbf16, #tpu.memory_space<vmem>>, vector<8x32xbf16>
    tpu.vector_store %arg14[%c0_16, %c0_17], %52 {strides = array<i32>} : memref<8x128xbf16, #tpu.memory_space<vmem>>, vector<8x32xbf16>,
    %54 = vector.extract_strided_slice %33 {offsets = [0, 32], sizes = [8, 32], strides = [1, 1]} : vector<8x128xbf16> to vector<8x32xbf16>
    %55 = vector.extract_strided_slice %34 {offsets = [0, 32], sizes = [8, 32], strides = [1, 1]} : vector<8x128xbf16> to vector<8x32xbf16>
    %56 = vector.extract_strided_slice %35 {offsets = [0, 32], sizes = [8, 32], strides = [1, 1]} : vector<8x128xbf16> to vector<8x32xbf16>
    %cst_18 = arith.constant dense<0.000000e+00> : vector<8x8xf32>
    %57 = tpu.matmul %54, %55, %cst_18 {dimension_numbers = #tpu.dot_dimension_numbers<[1], [1], [0], [0], [0, 0, 1, 0], [], []>} : vector<8x32xbf16>, vector<8x32xbf16>, vector<8x8xf32> -> vector<8x8xf32>
    %cst_19 = arith.constant dense<0xFF800000> : vector<8xf32>
    %58 = vector.multi_reduction <maximumf>, %57, %cst_19 [1] : vector<8x8xf32> to vector<8xf32>
    %59 = vector.shape_cast %58 : vector<8xf32> to vector<8x1xf32>
    %60 = vector.broadcast %59 : vector<8x1xf32> to vector<8x8xf32>
    %61 = arith.subf %57, %60 : vector<8x8xf32>
    %62 = math.exp %61 : vector<8x8xf32>
    %cst_20 = arith.constant dense<0.000000e+00> : vector<8xf32>
    %63 = vector.multi_reduction <add>, %62, %cst_20 [1] : vector<8x8xf32> to vector<8xf32>
    %64 = vector.shape_cast %63 : vector<8xf32> to vector<8x1xf32>
    %65 = tpu.reciprocal %64 {approx = true} : vector<8x1xf32> -> vector<8x1xf32>
    %66 = vector.broadcast %65 : vector<8x1xf32> to vector<8x8xf32>
    %67 = arith.mulf %62, %66 : vector<8x8xf32>
    %68 = arith.truncf %67 : vector<8x8xf32> to vector<8x8xbf16>
    %cst_21 = arith.constant dense<0.000000e+00> : vector<8x32xf32>
    %69 = tpu.matmul %68, %56, %cst_21 {dimension_numbers = #tpu.dot_dimension_numbers<[1], [0], [0], [1], [0, 0, 1, 1], [], []>} : vector<8x8xbf16>, vector<8x32xbf16>, vector<8x32xf32> -> vector<8x32xf32>
    %70 = arith.truncf %69 : vector<8x32xf32> to vector<8x32xbf16>
    %c0_22 = arith.constant 0 : index
    %c32 = arith.constant 32 : index
    %71 = vector.load %arg14[%c0_22, %c32] : memref<8x128xbf16, #tpu.memory_space<vmem>>, vector<8x32xbf16>
    tpu.vector_store %arg14[%c0_22, %c32], %70 {strides = array<i32>} : memref<8x128xbf16, #tpu.memory_space<vmem>>, vector<8x32xbf16>,
    %72 = vector.extract_strided_slice %33 {offsets = [0, 64], sizes = [8, 32], strides = [1, 1]} : vector<8x128xbf16> to vector<8x32xbf16>
    %73 = vector.extract_strided_slice %34 {offsets = [0, 64], sizes = [8, 32], strides = [1, 1]} : vector<8x128xbf16> to vector<8x32xbf16>
    %74 = vector.extract_strided_slice %35 {offsets = [0, 64], sizes = [8, 32], strides = [1, 1]} : vector<8x128xbf16> to vector<8x32xbf16>
    %cst_23 = arith.constant dense<0.000000e+00> : vector<8x8xf32>
    %75 = tpu.matmul %72, %73, %cst_23 {dimension_numbers = #tpu.dot_dimension_numbers<[1], [1], [0], [0], [0, 0, 1, 0], [], []>} : vector<8x32xbf16>, vector<8x32xbf16>, vector<8x8xf32> -> vector<8x8xf32>
    %cst_24 = arith.constant dense<0xFF800000> : vector<8xf32>
    %76 = vector.multi_reduction <maximumf>, %75, %cst_24 [1] : vector<8x8xf32> to vector<8xf32>
    %77 = vector.shape_cast %76 : vector<8xf32> to vector<8x1xf32>
    %78 = vector.broadcast %77 : vector<8x1xf32> to vector<8x8xf32>
    %79 = arith.subf %75, %78 : vector<8x8xf32>
    %80 = math.exp %79 : vector<8x8xf32>
    %cst_25 = arith.constant dense<0.000000e+00> : vector<8xf32>
    %81 = vector.multi_reduction <add>, %80, %cst_25 [1] : vector<8x8xf32> to vector<8xf32>
    %82 = vector.shape_cast %81 : vector<8xf32> to vector<8x1xf32>
    %83 = tpu.reciprocal %82 {approx = true} : vector<8x1xf32> -> vector<8x1xf32>
    %84 = vector.broadcast %83 : vector<8x1xf32> to vector<8x8xf32>
    %85 = arith.mulf %80, %84 : vector<8x8xf32>
    %86 = arith.truncf %85 : vector<8x8xf32> to vector<8x8xbf16>
    %cst_26 = arith.constant dense<0.000000e+00> : vector<8x32xf32>
    %87 = tpu.matmul %86, %74, %cst_26 {dimension_numbers = #tpu.dot_dimension_numbers<[1], [0], [0], [1], [0, 0, 1, 1], [], []>} : vector<8x8xbf16>, vector<8x32xbf16>, vector<8x32xf32> -> vector<8x32xf32>
    %88 = arith.truncf %87 : vector<8x32xf32> to vector<8x32xbf16>
    %c0_27 = arith.constant 0 : index
    %c64 = arith.constant 64 : index
    %89 = vector.load %arg14[%c0_27, %c64] : memref<8x128xbf16, #tpu.memory_space<vmem>>, vector<8x32xbf16>
    tpu.vector_store %arg14[%c0_27, %c64], %88 {strides = array<i32>} : memref<8x128xbf16, #tpu.memory_space<vmem>>, vector<8x32xbf16>,
    %90 = vector.extract_strided_slice %33 {offsets = [0, 96], sizes = [8, 32], strides = [1, 1]} : vector<8x128xbf16> to vector<8x32xbf16>
    %91 = vector.extract_strided_slice %34 {offsets = [0, 96], sizes = [8, 32], strides = [1, 1]} : vector<8x128xbf16> to vector<8x32xbf16>
    %92 = vector.extract_strided_slice %35 {offsets = [0, 96], sizes = [8, 32], strides = [1, 1]} : vector<8x128xbf16> to vector<8x32xbf16>
    %cst_28 = arith.constant dense<0.000000e+00> : vector<8x8xf32>
    %93 = tpu.matmul %90, %91, %cst_28 {dimension_numbers = #tpu.dot_dimension_numbers<[1], [1], [0], [0], [0, 0, 1, 0], [], []>} : vector<8x32xbf16>, vector<8x32xbf16>, vector<8x8xf32> -> vector<8x8xf32>
    %cst_29 = arith.constant dense<0xFF800000> : vector<8xf32>
    %94 = vector.multi_reduction <maximumf>, %93, %cst_29 [1] : vector<8x8xf32> to vector<8xf32>
    %95 = vector.shape_cast %94 : vector<8xf32> to vector<8x1xf32>
    %96 = vector.broadcast %95 : vector<8x1xf32> to vector<8x8xf32>
    %97 = arith.subf %93, %96 : vector<8x8xf32>
    %98 = math.exp %97 : vector<8x8xf32>
    %cst_30 = arith.constant dense<0.000000e+00> : vector<8xf32>
    %99 = vector.multi_reduction <add>, %98, %cst_30 [1] : vector<8x8xf32> to vector<8xf32>
    %100 = vector.shape_cast %99 : vector<8xf32> to vector<8x1xf32>
    %101 = tpu.reciprocal %100 {approx = true} : vector<8x1xf32> -> vector<8x1xf32>
    %102 = vector.broadcast %101 : vector<8x1xf32> to vector<8x8xf32>
    %103 = arith.mulf %98, %102 : vector<8x8xf32>
    %104 = arith.truncf %103 : vector<8x8xf32> to vector<8x8xbf16>
    %cst_31 = arith.constant dense<0.000000e+00> : vector<8x32xf32>
    %105 = tpu.matmul %104, %92, %cst_31 {dimension_numbers = #tpu.dot_dimension_numbers<[1], [0], [0], [1], [0, 0, 1, 1], [], []>} : vector<8x8xbf16>, vector<8x32xbf16>, vector<8x32xf32> -> vector<8x32xf32>
    %106 = arith.truncf %105 : vector<8x32xf32> to vector<8x32xbf16>
    %c0_32 = arith.constant 0 : index
    %c96 = arith.constant 96 : index
    %107 = vector.load %arg14[%c0_32, %c96] : memref<8x128xbf16, #tpu.memory_space<vmem>>, vector<8x32xbf16>
    tpu.vector_store %arg14[%c0_32, %c96], %106 {strides = array<i32>} : memref<8x128xbf16, #tpu.memory_space<vmem>>, vector<8x32xbf16>,
    %c0_33 = arith.constant 0 : index
    %c0_34 = arith.constant 0 : index
    %108 = vector.load %arg14[%c0_33, %c0_34] : memref<8x128xbf16, #tpu.memory_space<vmem>>, vector<8x128xbf16>
    %c0_35 = arith.constant 0 : index
    %c0_36 = arith.constant 0 : index
    %109 = vector.load %arg5[%c0_35, %c0_36] : memref<128x128xbf16, #tpu.memory_space<vmem>>, vector<128x128xbf16>
    %cst_37 = arith.constant dense<0.000000e+00> : vector<8x128xf32>
    %110 = tpu.matmul %108, %109, %cst_37 {dimension_numbers = #tpu.dot_dimension_numbers<[1], [0], [0], [1], [0, 0, 1, 1], [], []>} : vector<8x128xbf16>, vector<128x128xbf16>, vector<8x128xf32> -> vector<8x128xf32>
    %111 = arith.addf %0, %110 : vector<8x128xf32>
    %c0_38 = arith.constant 0 : index
    %c0_39 = arith.constant 0 : index
    %112 = vector.load %arg6[%c0_38, %c0_39] : memref<1x128xf32, #tpu.memory_space<vmem>>, vector<1x128xf32>
    %113 = vector.shape_cast %112 : vector<1x128xf32> to vector<128xf32>
    %114 = vector.shape_cast %113 : vector<128xf32> to vector<1x128xf32>
    %115 = vector.broadcast %114 : vector<1x128xf32> to vector<8x128xf32>
    %116 = arith.addf %111, %115 : vector<8x128xf32>
    %c0_40 = arith.constant 0 : index
    %c0_41 = arith.constant 0 : index
    %117 = vector.load %arg7[%c0_40, %c0_41] : memref<1x128xf32, #tpu.memory_space<vmem>>, vector<1x128xf32>
    %118 = vector.shape_cast %117 : vector<1x128xf32> to vector<128xf32>
    %c0_42 = arith.constant 0 : index
    %c0_43 = arith.constant 0 : index
    %119 = vector.load %arg8[%c0_42, %c0_43] : memref<1x128xf32, #tpu.memory_space<vmem>>, vector<1x128xf32>
    %120 = vector.shape_cast %119 : vector<1x128xf32> to vector<128xf32>
    %cst_44 = arith.constant dense<0.000000e+00> : vector<8xf32>
    %121 = vector.multi_reduction <add>, %116, %cst_44 [1] : vector<8x128xf32> to vector<8xf32>
    %122 = vector.shape_cast %121 : vector<8xf32> to vector<8x1xf32>
    %cst_45 = arith.constant 3.125000e-02 : f32
    %123 = vector.broadcast %cst_45 : f32 to vector<8x1xf32>
    %124 = arith.mulf %122, %123 : vector<8x1xf32>
    %125 = arith.mulf %116, %116 : vector<8x128xf32>
    %cst_46 = arith.constant dense<0.000000e+00> : vector<8xf32>
    %126 = vector.multi_reduction <add>, %125, %cst_46 [1] : vector<8x128xf32> to vector<8xf32>
    %127 = vector.shape_cast %126 : vector<8xf32> to vector<8x1xf32>
    %cst_47 = arith.constant 3.125000e-02 : f32
    %128 = vector.broadcast %cst_47 : f32 to vector<8x1xf32>
    %129 = arith.mulf %127, %128 : vector<8x1xf32>
    %130 = arith.mulf %124, %124 : vector<8x1xf32>
    %131 = arith.subf %129, %130 : vector<8x1xf32>
    %132 = vector.broadcast %124 : vector<8x1xf32> to vector<8x128xf32>
    %133 = arith.subf %116, %132 : vector<8x128xf32>
    %cst_48 = arith.constant 9.99999974E-6 : f32
    %134 = vector.broadcast %cst_48 : f32 to vector<8x1xf32>
    %135 = arith.addf %131, %134 : vector<8x1xf32>
    %136 = math.rsqrt %135 : vector<8x1xf32>
    %137 = vector.broadcast %136 : vector<8x1xf32> to vector<8x128xf32>
    %138 = arith.mulf %133, %137 : vector<8x128xf32>
    %139 = vector.shape_cast %118 : vector<128xf32> to vector<1x128xf32>
    %140 = vector.broadcast %139 : vector<1x128xf32> to vector<8x128xf32>
    %141 = arith.mulf %138, %140 : vector<8x128xf32>
    %142 = vector.shape_cast %120 : vector<128xf32> to vector<1x128xf32>
    %143 = vector.broadcast %142 : vector<1x128xf32> to vector<8x128xf32>
    %144 = arith.addf %141, %143 : vector<8x128xf32>
    %145 = arith.truncf %144 : vector<8x128xf32> to vector<8x128xbf16>
    %cst_49 = arith.constant 0.000000e+00 : f32
    %146 = vector.broadcast %cst_49 : f32 to vector<8x128xf32>
    %c0_50 = arith.constant 0 : index
    %c0_51 = arith.constant 0 : index
    %147 = vector.load %arg15[%c0_50, %c0_51] : memref<8x128xf32, #tpu.memory_space<vmem>>, vector<8x128xf32>
    tpu.vector_store %arg15[%c0_50, %c0_51], %146 {strides = array<i32>} : memref<8x128xf32, #tpu.memory_space<vmem>>, vector<8x128xf32>,
    %c1_i32 = arith.constant 1 : i32
    %c1_i32_52 = arith.constant 1 : i32
    %148 = arith.muli %c1_i32, %c1_i32_52 : i32
    "tpu.region"() ({
      %alloca = memref.alloca() : memref<128x128xbf16, #tpu.memory_space<vmem>>
      %alloca_59 = memref.alloca() : memref<1x128xf32, #tpu.memory_space<vmem>>
      %alloca_60 = memref.alloca() : memref<128x128xbf16, #tpu.memory_space<vmem>>
      %c0_i32 = arith.constant 0 : i32
      %157 = arith.cmpi sgt, %148, %c0_i32 : i32
      %158 = arith.extui %157 : i1 to i32
      %c0_i32_61 = arith.constant 0 : i32
      %159 = arith.cmpi ne, %158, %c0_i32_61 : i32
      scf.if %159 {
        %c1_i32_62 = arith.constant 1 : i32
        %c1_i32_63 = arith.constant 1 : i32
        %160 = arith.muli %c1_i32_62, %c1_i32_63 : i32
        %c1_i32_64 = arith.constant 1 : i32
        %161 = arith.subi %160, %c1_i32_64 : i32
        %c0_i32_65 = arith.constant 0 : i32
        %162 = arith.cmpi eq, %161, %c0_i32_65 : i32
        %true = arith.constant true
        %c0_i32_66 = arith.constant 0 : i32
        %c-1_i32 = arith.constant -1 : i32
        %163 = arith.select %true, %c-1_i32, %c0_i32_66 : i32
        %c-1_i32_67 = arith.constant -1 : i32
        %164 = arith.cmpi eq, %163, %c-1_i32_67 : i32
        %c0_i32_68 = arith.constant 0 : i32
        %165 = arith.select %164, %c0_i32_68, %163 : i32
        %true_69 = arith.constant true
        %c0_i32_70 = arith.constant 0 : i32
        %c1_i32_71 = arith.constant 1 : i32
        %166 = arith.select %true_69, %c1_i32_71, %c0_i32_70 : i32
        %c1_i32_72 = arith.constant 1 : i32
        %167 = arith.cmpi eq, %166, %c1_i32_72 : i32
        %c0_i32_73 = arith.constant 0 : i32
        %168 = arith.select %167, %c0_i32_73, %166 : i32
        %true_74 = arith.constant true
        %c0_i32_75 = arith.constant 0 : i32
        %c1_i32_76 = arith.constant 1 : i32
        %169 = arith.select %true_74, %c1_i32_76, %c0_i32_75 : i32
        %c1_i32_77 = arith.constant 1 : i32
        %170 = arith.cmpi eq, %169, %c1_i32_77 : i32
        %c0_i32_78 = arith.constant 0 : i32
        %171 = arith.select %170, %c0_i32_78, %169 : i32
        "tpu.region"() ({
          %193 = tpu.sem_alloc : memref<!tpu.dma_semaphore, #tpu.memory_space<semaphore_mem>>
          tpu.enqueue_dma source(%arg10 : memref<128x128xbf16, #tpu.memory_space<any>>) target(%alloca : memref<128x128xbf16, #tpu.memory_space<vmem>>) target_semaphore(%193 : memref<!tpu.dma_semaphore, #tpu.memory_space<semaphore_mem>>)
          tpu.wait_dma2 semaphore(%193 : memref<!tpu.dma_semaphore, #tpu.memory_space<semaphore_mem>>) src(%arg10 : memref<128x128xbf16, #tpu.memory_space<any>>) dst(%alloca : memref<128x128xbf16, #tpu.memory_space<vmem>>)
          tpu.yield
        }) : () -> ()
        "tpu.region"() ({
          %193 = tpu.sem_alloc : memref<!tpu.dma_semaphore, #tpu.memory_space<semaphore_mem>>
          tpu.enqueue_dma source(%arg11 : memref<1x128xf32, #tpu.memory_space<any>>) target(%alloca_59 : memref<1x128xf32, #tpu.memory_space<vmem>>) target_semaphore(%193 : memref<!tpu.dma_semaphore, #tpu.memory_space<semaphore_mem>>)
          tpu.wait_dma2 semaphore(%193 : memref<!tpu.dma_semaphore, #tpu.memory_space<semaphore_mem>>) src(%arg11 : memref<1x128xf32, #tpu.memory_space<any>>) dst(%alloca_59 : memref<1x128xf32, #tpu.memory_space<vmem>>)
          tpu.yield
        }) : () -> ()
        "tpu.region"() ({
          %193 = tpu.sem_alloc : memref<!tpu.dma_semaphore, #tpu.memory_space<semaphore_mem>>
          tpu.enqueue_dma source(%arg12 : memref<128x128xbf16, #tpu.memory_space<any>>) target(%alloca_60 : memref<128x128xbf16, #tpu.memory_space<vmem>>) target_semaphore(%193 : memref<!tpu.dma_semaphore, #tpu.memory_space<semaphore_mem>>)
          tpu.wait_dma2 semaphore(%193 : memref<!tpu.dma_semaphore, #tpu.memory_space<semaphore_mem>>) src(%arg12 : memref<128x128xbf16, #tpu.memory_space<any>>) dst(%alloca_60 : memref<128x128xbf16, #tpu.memory_space<vmem>>)
          tpu.yield
        }) : () -> ()
        %c0_i32_79 = arith.constant 0 : i32
        %c0_i32_80 = arith.constant 0 : i32
        %c0_i32_81 = arith.constant 0 : i32
        %c0_i32_82 = arith.constant 0 : i32
        %c0_i32_83 = arith.constant 0 : i32
        %c0_i32_84 = arith.constant 0 : i32
        %c0_i32_85 = arith.constant 0 : i32
        %c0_i32_86 = arith.constant 0 : i32
        %172 = arith.subi %148, %c0_i32_82 : i32
        %173 = arith.addi %c0_i32_82, %172 : i32
        %c1_i32_87 = arith.constant 1 : i32
        %174:4 = scf.for %arg16 = %c0_i32_82 to %173 step %c1_i32_87 iter_args(%arg17 = %c0_i32_83, %arg18 = %c0_i32_84, %arg19 = %c0_i32_85, %arg20 = %c0_i32_86) -> (i32, i32, i32, i32)  : i32 {
          %c1_i32_112 = arith.constant 1 : i32
          %c1_i32_113 = arith.constant 1 : i32
          %193 = arith.muli %c1_i32_112, %c1_i32_113 : i32
          %c0_i32_114 = arith.constant 0 : i32
          %194 = arith.cmpi eq, %arg16, %c0_i32_114 : i32
          %c1_i32_115 = arith.constant 1 : i32
          %195 = arith.subi %193, %c1_i32_115 : i32
          %196 = arith.cmpi eq, %arg16, %195 : i32
          %true_116 = arith.constant true
          %c0_i32_117 = arith.constant 0 : i32
          %c-1_i32_118 = arith.constant -1 : i32
          %197 = arith.select %true_116, %c-1_i32_118, %c0_i32_117 : i32
          %c-1_i32_119 = arith.constant -1 : i32
          %198 = arith.cmpi eq, %197, %c-1_i32_119 : i32
          %c0_i32_120 = arith.constant 0 : i32
          %199 = arith.select %198, %c0_i32_120, %197 : i32
          %true_121 = arith.constant true
          %c0_i32_122 = arith.constant 0 : i32
          %c1_i32_123 = arith.constant 1 : i32
          %200 = arith.select %true_121, %c1_i32_123, %c0_i32_122 : i32
          %c1_i32_124 = arith.constant 1 : i32
          %201 = arith.cmpi eq, %200, %c1_i32_124 : i32
          %c0_i32_125 = arith.constant 0 : i32
          %202 = arith.select %201, %c0_i32_125, %200 : i32
          %true_126 = arith.constant true
          %c0_i32_127 = arith.constant 0 : i32
          %c1_i32_128 = arith.constant 1 : i32
          %203 = arith.select %true_126, %c1_i32_128, %c0_i32_127 : i32
          %c1_i32_129 = arith.constant 1 : i32
          %204 = arith.cmpi eq, %203, %c1_i32_129 : i32
          %c0_i32_130 = arith.constant 0 : i32
          %205 = arith.select %204, %c0_i32_130, %203 : i32
          "tpu.trace_start"() <{level = 10 : i32, message = "ep_run_kernel"}> : () -> ()
          %c0_131 = arith.constant 0 : index
          %c0_132 = arith.constant 0 : index
          %206 = vector.load %alloca[%c0_131, %c0_132] : memref<128x128xbf16, #tpu.memory_space<vmem>>, vector<128x128xbf16>
          %cst_133 = arith.constant dense<0.000000e+00> : vector<8x128xf32>
          %207 = tpu.matmul %145, %206, %cst_133 {dimension_numbers = #tpu.dot_dimension_numbers<[1], [0], [0], [1], [0, 0, 1, 1], [], []>} : vector<8x128xbf16>, vector<128x128xbf16>, vector<8x128xf32> -> vector<8x128xf32>
          %c0_134 = arith.constant 0 : index
          %c0_135 = arith.constant 0 : index
          %208 = vector.load %alloca_59[%c0_134, %c0_135] : memref<1x128xf32, #tpu.memory_space<vmem>>, vector<1x128xf32>
          %209 = vector.shape_cast %208 : vector<1x128xf32> to vector<128xf32>
          %210 = vector.shape_cast %209 : vector<128xf32> to vector<1x128xf32>
          %211 = vector.broadcast %210 : vector<1x128xf32> to vector<8x128xf32>
          %212 = arith.addf %207, %211 : vector<8x128xf32>
          %cst_136 = arith.constant 5.000000e-01 : f32
          %213 = vector.broadcast %cst_136 : f32 to vector<8x128xf32>
          %214 = arith.mulf %213, %212 : vector<8x128xf32>
          %cst_137 = arith.constant 0.707106769 : f32
          %215 = vector.broadcast %cst_137 : f32 to vector<8x128xf32>
          %216 = arith.mulf %212, %215 : vector<8x128xf32>
          %217 = math.erf %216 : vector<8x128xf32>
          %cst_138 = arith.constant 1.000000e+00 : f32
          %218 = vector.broadcast %cst_138 : f32 to vector<8x128xf32>
          %219 = arith.addf %218, %217 : vector<8x128xf32>
          %220 = arith.mulf %214, %219 : vector<8x128xf32>
          %c0_139 = arith.constant 0 : index
          %c0_140 = arith.constant 0 : index
          %221 = vector.load %arg15[%c0_139, %c0_140] : memref<8x128xf32, #tpu.memory_space<vmem>>, vector<8x128xf32>
          %222 = arith.truncf %220 : vector<8x128xf32> to vector<8x128xbf16>
          %c0_141 = arith.constant 0 : index
          %c0_142 = arith.constant 0 : index
          %223 = vector.load %alloca_60[%c0_141, %c0_142] : memref<128x128xbf16, #tpu.memory_space<vmem>>, vector<128x128xbf16>
          %cst_143 = arith.constant dense<0.000000e+00> : vector<8x128xf32>
          %224 = tpu.matmul %222, %223, %cst_143 {dimension_numbers = #tpu.dot_dimension_numbers<[1], [0], [0], [1], [0, 0, 1, 1], [], []>} : vector<8x128xbf16>, vector<128x128xbf16>, vector<8x128xf32> -> vector<8x128xf32>
          %225 = arith.addf %221, %224 : vector<8x128xf32>
          %c0_144 = arith.constant 0 : index
          %c0_145 = arith.constant 0 : index
          %226 = vector.load %arg15[%c0_144, %c0_145] : memref<8x128xf32, #tpu.memory_space<vmem>>, vector<8x128xf32>
          tpu.vector_store %arg15[%c0_144, %c0_145], %225 {strides = array<i32>} : memref<8x128xf32, #tpu.memory_space<vmem>>, vector<8x128xf32>,
          "tpu.trace_stop"() : () -> ()
          %false = arith.constant false
          %227 = arith.ori %false, %196 : i1
          %c1_i32_146 = arith.constant 1 : i32
          %228 = arith.addi %arg17, %c1_i32_146 : i32
          %229 = arith.select %227, %228, %arg17 : i32
          %false_147 = arith.constant false
          %230 = arith.ori %false_147, %196 : i1
          %c1_i32_148 = arith.constant 1 : i32
          %231 = arith.addi %arg18, %c1_i32_148 : i32
          %232 = arith.select %230, %231, %arg18 : i32
          %false_149 = arith.constant false
          %233 = arith.ori %false_149, %196 : i1
          %c1_i32_150 = arith.constant 1 : i32
          %234 = arith.addi %arg19, %c1_i32_150 : i32
          %235 = arith.select %233, %234, %arg19 : i32
          %true_151 = arith.constant true
          %c0_i32_152 = arith.constant 0 : i32
          %c1_i32_153 = arith.constant 1 : i32
          %236 = arith.select %true_151, %c1_i32_153, %c0_i32_152 : i32
          %c1_i32_154 = arith.constant 1 : i32
          %237 = arith.cmpi eq, %236, %c1_i32_154 : i32
          %c0_i32_155 = arith.constant 0 : i32
          %238 = arith.select %237, %c0_i32_155, %236 : i32
          %c0_i32_156 = arith.constant 0 : i32
          scf.yield %229, %232, %235, %c0_i32_156 : i32, i32, i32, i32
        }
        %c1_i32_88 = arith.constant 1 : i32
        %175 = arith.subi %174#3, %c1_i32_88 : i32
        %true_89 = arith.constant true
        %176 = arith.select %true_89, %175, %174#3 : i32
        %c-1_i32_90 = arith.constant -1 : i32
        %177 = arith.cmpi eq, %176, %c-1_i32_90 : i32
        %c0_i32_91 = arith.constant 0 : i32
        %178 = arith.select %177, %c0_i32_91, %176 : i32
        %c1_i32_92 = arith.constant 1 : i32
        %179 = arith.subi %148, %c1_i32_92 : i32
        %c1_i32_93 = arith.constant 1 : i32
        %c1_i32_94 = arith.constant 1 : i32
        %180 = arith.muli %c1_i32_93, %c1_i32_94 : i32
        %c0_i32_95 = arith.constant 0 : i32
        %181 = arith.cmpi eq, %179, %c0_i32_95 : i32
        %c1_i32_96 = arith.constant 1 : i32
        %182 = arith.subi %180, %c1_i32_96 : i32
        %183 = arith.cmpi eq, %179, %182 : i32
        %true_97 = arith.constant true
        %c0_i32_98 = arith.constant 0 : i32
        %c-1_i32_99 = arith.constant -1 : i32
        %184 = arith.select %true_97, %c-1_i32_99, %c0_i32_98 : i32
        %c-1_i32_100 = arith.constant -1 : i32
        %185 = arith.cmpi eq, %184, %c-1_i32_100 : i32
        %c0_i32_101 = arith.constant 0 : i32
        %186 = arith.select %185, %c0_i32_101, %184 : i32
        %true_102 = arith.constant true
        %c0_i32_103 = arith.constant 0 : i32
        %c1_i32_104 = arith.constant 1 : i32
        %187 = arith.select %true_102, %c1_i32_104, %c0_i32_103 : i32
        %c1_i32_105 = arith.constant 1 : i32
        %188 = arith.cmpi eq, %187, %c1_i32_105 : i32
        %c0_i32_106 = arith.constant 0 : i32
        %189 = arith.select %188, %c0_i32_106, %187 : i32
        %true_107 = arith.constant true
        %c0_i32_108 = arith.constant 0 : i32
        %c1_i32_109 = arith.constant 1 : i32
        %190 = arith.select %true_107, %c1_i32_109, %c0_i32_108 : i32
        %c1_i32_110 = arith.constant 1 : i32
        %191 = arith.cmpi eq, %190, %c1_i32_110 : i32
        %c0_i32_111 = arith.constant 0 : i32
        %192 = arith.select %191, %c0_i32_111, %190 : i32
      } else {
      }
      tpu.yield
    }) : () -> ()
    %c0_53 = arith.constant 0 : index
    %c0_54 = arith.constant 0 : index
    %149 = vector.load %arg15[%c0_53, %c0_54] : memref<8x128xf32, #tpu.memory_space<vmem>>, vector<8x128xf32>
    %150 = arith.addf %116, %149 : vector<8x128xf32>
    %c0_55 = arith.constant 0 : index
    %c0_56 = arith.constant 0 : index
    %151 = vector.load %arg9[%c0_55, %c0_56] : memref<1x128xf32, #tpu.memory_space<vmem>>, vector<1x128xf32>
    %152 = vector.shape_cast %151 : vector<1x128xf32> to vector<128xf32>
    %153 = vector.shape_cast %152 : vector<128xf32> to vector<1x128xf32>
    %154 = vector.broadcast %153 : vector<1x128xf32> to vector<8x128xf32>
    %155 = arith.addf %150, %154 : vector<8x128xf32>
    %c0_57 = arith.constant 0 : index
    %c0_58 = arith.constant 0 : index
    %156 = vector.load %arg13[%c0_57, %c0_58] : memref<8x128xf32, #tpu.memory_space<vmem>>, vector<8x128xf32>
    tpu.vector_store %arg13[%c0_57, %c0_58], %155 {strides = array<i32>} : memref<8x128xf32, #tpu.memory_space<vmem>>, vector<8x128xf32>,
    return
  }
  func.func @transform_0(%arg0: i32) -> (i32, i32) {
    %c0_i32 = arith.constant 0 : i32
    %c0_i32_0 = arith.constant 0 : i32
    return %arg0, %c0_i32 : i32, i32
  }
  func.func @transform_1(%arg0: i32) -> (i32, i32) {
    %c0_i32 = arith.constant 0 : i32
    %c0_i32_0 = arith.constant 0 : i32
    %c0_i32_1 = arith.constant 0 : i32
    return %c0_i32, %c0_i32_0 : i32, i32
  }
  func.func @transform_2(%arg0: i32) -> (i32, i32) {
    %c0_i32 = arith.constant 0 : i32
    %c0_i32_0 = arith.constant 0 : i32
    %c0_i32_1 = arith.constant 0 : i32
    return %c0_i32, %c0_i32_0 : i32, i32
  }
  func.func @transform_3(%arg0: i32) -> (i32, i32) {
    %c0_i32 = arith.constant 0 : i32
    %c0_i32_0 = arith.constant 0 : i32
    %c0_i32_1 = arith.constant 0 : i32
    return %c0_i32, %c0_i32_0 : i32, i32
  }
  func.func @transform_4(%arg0: i32) -> (i32, i32) {
    %c0_i32 = arith.constant 0 : i32
    %c0_i32_0 = arith.constant 0 : i32
    %c0_i32_1 = arith.constant 0 : i32
    return %c0_i32, %c0_i32_0 : i32, i32
  }
  func.func @transform_5(%arg0: i32) -> (i32, i32) {
    %c0_i32 = arith.constant 0 : i32
    %c0_i32_0 = arith.constant 0 : i32
    %c0_i32_1 = arith.constant 0 : i32
    return %c0_i32, %c0_i32_0 : i32, i32
  }
  func.func @transform_6(%arg0: i32) -> (i32, i32) {
    %c0_i32 = arith.constant 0 : i32
    %c0_i32_0 = arith.constant 0 : i32
    %c0_i32_1 = arith.constant 0 : i32
    return %c0_i32, %c0_i32_0 : i32, i32
  }
  func.func @transform_7(%arg0: i32) -> (i32, i32) {
    %c0_i32 = arith.constant 0 : i32
    %c0_i32_0 = arith.constant 0 : i32
    %c0_i32_1 = arith.constant 0 : i32
    return %c0_i32, %c0_i32_0 : i32, i32
  }
  func.func @transform_8(%arg0: i32) -> (i32, i32) {
    %c0_i32 = arith.constant 0 : i32
    %c0_i32_0 = arith.constant 0 : i32
    %c0_i32_1 = arith.constant 0 : i32
    return %c0_i32, %c0_i32_0 : i32, i32
  }
  func.func @transform_12(%arg0: i32) -> (i32, i32) {
    %c0_i32 = arith.constant 0 : i32
    %c0_i32_0 = arith.constant 0 : i32
    return %arg0, %c0_i32 : i32, i32
  }
}

</mosaic_0001>

<bundles_post_ra>
// kernel: tpu_custom_call.1
= control target key start
LH: loop header
LB: loop body
LE: loop exit
PB: predicated region body
PF: predicated region fallthrough
CT: control target
= control target key end

     0   :  { %s2656_s0 = inlined_call_operand.hbm [shape: f32[16,128], index: 0, kind: input, shape index: {}]   ;;  %s2657_s1 = inlined_call_operand.vmem [shape: f32[1,128], index: 1, kind: input, shape index: {}]   ;;  %s2658_s2 = inlined_call_operand.vmem [shape: f32[1,128], index: 2, kind: input, shape index: {}]   ;;  %s2659_s3 = inlined_call_operand.hbm [shape: bf16[128,384], index: 3, kind: input, shape index: {}]   ;;  %s2660_s4 = inlined_call_operand.hbm [shape: bf16[128,128], index: 4, kind: input, shape index: {}]   ;;  %s2661_s5 = inlined_call_operand.vmem [shape: f32[1,128], index: 5, kind: input, shape index: {}]   ;;  %s2662_s6 = inlined_call_operand.vmem [shape: f32[1,128], index: 6, kind: input, shape index: {}]   ;;  %s2663_s7 = inlined_call_operand.vmem [shape: f32[1,128], index: 7, kind: input, shape index: {}]   ;;  %s2664_s8 = inlined_call_operand.vmem [shape: f32[1,128], index: 8, kind: input, shape index: {}]   ;;  %s2665_s9 = inlined_call_operand.hbm [shape: bf16[128,128], index: 9, kind: input, shape index: {}]   ;;  %s2666_s10 = inlined_call_operand.vmem [shape: f32[1,128], index: 10, kind: input, shape index: {}]   ;;  %s2667_s11 = inlined_call_operand.hbm [shape: bf16[128,128], index: 11, kind: input, shape index: {}]   ;;  %s2668_s12 = inlined_call_operand.hbm [shape: f32[16,128], index: 12, kind: output, shape index: {}]  }
   0x1   :  { %2675 = sst [smem:[#allocation32_spill]] %s2656_s0 }
   0x2   :  { %2676 = sst [smem:[#allocation33_spill]] %s2664_s8 }
   0x3   :  { %2677 = sst [smem:[#allocation34_spill]] %s2668_s12 }
   0x4   :  { %17 = vsyncpa [#allocation5], 0 }
   0x5   :  { %19 = vsyncpa [#allocation5 + $0x1], 0 }
   0x6   :  { %20 = vsyncpa [#allocation8], 0 }
   0x7   :  { %21 = vsyncpa [#allocation6], 0 }
   0x8   :  { %23 = vsyncpa [#allocation6 + $0x1], 0  ;;  %s2267_s21 = smov 0   ;;  %s2269_s22 = smov 0  }
   0x9   :  { %s2271_s23 = smov 0   ;;  %s2273_s24 = smov 0  }
   0xa LB: > { %2678 = sst [smem:[#allocation30_spill]] %s2170_s21  ;;  %s2288_s25 = sadd.s32 4294967295, %s2182_s24   ;;  %s2182_s24 = sphi %s2273_s24, %s2702_s24   ;;  %s2178_s23 = sphi %s2271_s23, %s2701_s23   ;;  %s2174_s22 = sphi %s2269_s22, %s2700_s22   ;;  %s2170_s21 = sphi %s2267_s21, %s2699_s21  }
   0xb   : > { %s1584_s26 = sadd.s32 4294967294, %s2182_s24   ;;  %p49_p0 = scmp.ne.s32.totalorder %s2174_s22, %s2170_s21 }
   0xc   : > { %p2670_p1 = scmp.eq.s32.totalorder %s2288_s25, 0  ;;  %p247_p3 = scmp.eq.s32.totalorder %s1584_s26, 1 }
   0xd   : > { %p1585_p5 = scmp.ge.s32.totalorder %s2182_s24, 1  ;;  %p254_p7 = scmp.lt.s32.totalorder %s2182_s24, 3 }
   0xe   : > { %p2297_p4 = por %p2670_p1, %p49_p0  ;;  %p2302_p6 = por %p247_p3, %p49_p0 }
   0xf   : > { %p2307_p8 = pnand %p1585_p5, %p254_p7  ;;  %s2184_s30 = smov [#allocation7]  }
  0x10   : > { %s2679_s27 = scalar_select %p2297_p4, 1, 0 }
  0x11   : > { %s2680_s28 = scalar_select %p2302_p6, 1, 0 }
  0x12   : > { %s272_s13 = sshll.u32 %s2184_s30, 4  ;;  %p1845_p9 = pneg %p2307_p8  ;;  %s2311_s13 = int_to_ptr.vmem [resolvable:$true] %s272_s13 }
  0x13   : > { %2681 = sst [smem:[#allocation31_spill]] %s2680_s28  ;;  %s2185_s15 = smov [#allocation9]  }
  0x14   : > { %p2318_p11 = pnand %p1845_p9, %p2670_p1  ;;  %s285_s16 = sshll.u32 %s2185_s15, 4  ;;  %s2322_s16 = int_to_ptr.vmem [resolvable:$true] %s285_s16 }
  0x15   : > { %s1976_s19 = scalar_lea.hbm %s2659_s3, 3072 }
  0x16   : > { %p1977_p12 = scmp.ne.s32.totalorder %s2659_s3, %s1976_s19  ;;  %p1978_p13 = pneg %p2318_p11 }
  0x17   : > { %p1983_p5 = scmp.lt.u32.totalorder %s1976_s19, %s2659_s3 }
  0x18   : > { %p1979_p0 = pnand %p1978_p13, %p1977_p12 }
  0x1a   : > { %p1980_p3 = pneg %p1979_p0 }
  0x1c   : > { %p1985_p7 = pnand %p1983_p5, %p1980_p3 }
  0x1e   : > { %1988 = shalt.err (!%p1985_p7)
}
  0x1f   : > { %s1989_s15 = scalar_lea.vmem %s2311_s13, 3072  ;;  %p1997_p2 = scmp.lt.s32.totalorder %s2311_s13, %s2311_s13 }
  0x20   : > { %p1990_p9 = scmp.ne.s32.totalorder %s2311_s13, %s1989_s15  ;;  %p1998_p12 = scmp.lt.s32.totalorder %s1989_s15, %s1989_s15 }
  0x22   : > { %p1992_p10 = pnand %p1990_p9, %p1978_p13  ;;  %p1999_p0 = por %p1998_p12, %p1997_p2 }
  0x24   : > { %p1993_p1 = pneg %p1992_p10 }
  0x26   : > { %p2000_p6 = pnand %p1999_p0, %p1993_p1 }
  0x28   : > { %2003 = shalt.err (!%p2000_p6)
}
  0x29   : > { %s2186_s28 = smov 192   ;;  %s2187_s17 = smov 12  }
  0x2a   : > { %1848 = dma.hbm_to_vmem [thread:$0]  (!%p2318_p11), %s2659_s3, 3072, %s2311_s13, [#allocation8], %s2186_s28, %s2186_s28, %s2187_s17  }
  0x2b   : > { %s2004_s30 = scalar_lea.hbm %s2660_s4, 1024 }
  0x2c   : > { %p2005_p2 = scmp.ne.s32.totalorder %s2660_s4, %s2004_s30  ;;  %p2011_p10 = scmp.lt.u32.totalorder %s2004_s30, %s2660_s4 }
  0x2e   : > { %p2007_p1 = pnand %p2005_p2, %p1978_p13 }
  0x30   : > { %p2008_p6 = pneg %p2007_p1 }
  0x32   : > { %p2013_p3 = pnand %p2011_p10, %p2008_p6 }
  0x34   : > { %2016 = shalt.err (!%p2013_p3)
}
  0x35   : > { %s2017_s13 = scalar_lea.vmem %s2322_s16, 1024  ;;  %p2025_p12 = scmp.lt.s32.totalorder %s2322_s16, %s2322_s16 }
  0x36   : > { %p2018_p5 = scmp.ne.s32.totalorder %s2322_s16, %s2017_s13  ;;  %p2026_p0 = scmp.lt.s32.totalorder %s2017_s13, %s2017_s13 }
  0x38   : > { %p2020_p7 = pnand %p2018_p5, %p1978_p13  ;;  %p2027_p2 = por %p2026_p0, %p2025_p12 }
  0x3a   : > { %p2021_p9 = pneg %p2020_p7 }
  0x3c   : > { %p2028_p1 = pnand %p2027_p2, %p2021_p9 }
  0x3e   : > { %2031 = shalt.err (!%p2028_p1)
}
  0x3f   : > { %s2188_s8 = smov 64   ;;  %s2189_s12 = smov 4  }
  0x40   : > { %1851 = dma.hbm_to_vmem [thread:$0]  (!%p2318_p11), %s2660_s4, 1024, %s2322_s16, [#allocation8], %s2188_s8, %s2188_s8, %s2189_s12  }
  0x41   : > { %s2377_s17 = sadd.s32 1, %s2182_s24   ;;  %s36_s19 = sadd.s32 1, %s2178_s23 }
  0x42   : > { %s33_s18 = ssub.s32 %s2182_s24, %s2377_s17  ;;  %p43_p6 = scmp.ne.s32.totalorder %s2178_s23, %s2174_s22 }
  0x43   : > { %p34_p13 = scmp.eq.s32.totalorder %s33_s18, 0  ;;  %p44_p10 = scmp.eq.s32.totalorder %s2182_s24, 0 }
  0x44   : > { %p2684_p5 = scmp.eq.s32.totalorder %s2288_s25, 1  ;;  %p1862_p9 = scmp.lt.s32.totalorder %s2182_s24, 2 }
  0x45   : > { %s2386_s20 = scalar_select %p34_p13, %s2178_s23, %s36_s19  }
  0x46   : > { %p45_p3 = por %p44_p10, %p43_p6  ;;  %p2390_p7 = por %p2684_p5, %p43_p6 }
  0x47   : > { %s311_s14 = sand.u32 1, %s2178_s23   ;;  %s1590_s16 = sshll.u32 %s2182_s24, 7 }
  0x48   : > { %s2685_s26 = scalar_select %p2390_p7, 1, 0 }
  0x49   : > { %s1589_s30 = sshll.u32 %s311_s14, 3  ;;  %s2686_s0 = sld [smem:[#allocation32_spill]] }
  0x4a   : > { %s315_s12 = scalar_lea.vmem [#allocation4], %s1589_s30  ;;  %p2404_p11 = pnand %p1862_p9, %p45_p3 }
  0x4b   : > { %s322_s21 = sshll.u32 %s315_s12, 4  ;;  %s312_s18 = scalar_lea.sflag [#allocation5], %s311_s14  ;;  %s2402_s21 = int_to_ptr.vmem [resolvable:$true] %s322_s21 }
  0x4c   : > { %p2034_p0 = pneg %p2404_p11 }
  0x4f   : > { %s2400_s8 = scalar_lea.hbm %s2686_s0, %s1590_s16  ;;  %s2037_s15 = scalar_lea.hbm %s2686_s0, 256 }
  0x50   : > { %s2032_s19 = scalar_lea.hbm %s2400_s8, 128  ;;  %p2038_p13 = scmp.lt.u32.totalorder %s2400_s8, %s2686_s0 }
  0x51   : > { %p2033_p12 = scmp.ne.s32.totalorder %s2400_s8, %s2032_s19  ;;  %p2039_p6 = scmp.lt.u32.totalorder %s2037_s15, %s2032_s19 }
  0x52   : > { %p2041_p3 = scmp.lt.u32.totalorder %s2032_s19, %s2400_s8 }
  0x53   : > { %p2035_p2 = pnand %p2034_p0, %p2033_p12  ;;  %p2040_p10 = por %p2039_p6, %p2038_p13 }
  0x55   : > { %p2036_p1 = pneg %p2035_p2  ;;  %p2042_p5 = por %p2041_p3, %p2040_p10 }
  0x57   : > { %p2043_p9 = pnand %p2042_p5, %p2036_p1 }
  0x59   : > { %2046 = shalt.err (!%p2043_p9)
}
  0x5a   : > { %s2047_s14 = scalar_lea.vmem %s2402_s21, 128  ;;  %s2190_s16 = smov [#allocation4]  }
  0x5b   : > { %p2048_p12 = scmp.ne.s32.totalorder %s2402_s21, %s2047_s14  ;;  %s2052_s30 = sshll.u32 %s2190_s16, 4  ;;  %s2053_s30 = int_to_ptr.vmem [resolvable:$false] %s2052_s30 }
  0x5c   : > { %s2054_s13 = scalar_lea.vmem %s2053_s30, 256  ;;  %p2055_p4 = scmp.lt.s32.totalorder %s2402_s21, %s2053_s30 }
  0x5d   : > { %p2050_p2 = pnand %p2048_p12, %p2034_p0  ;;  %p2056_p13 = scmp.lt.s32.totalorder %s2054_s13, %s2047_s14 }
  0x5f   : > { %p2051_p7 = pneg %p2050_p2  ;;  %p2057_p6 = por %p2056_p13, %p2055_p4 }
  0x61   : > { %p2058_p10 = pnand %p2057_p6, %p2051_p7 }
  0x63   : > { %2061 = shalt.err (!%p2058_p10)
}
  0x64   : > { %1855 = dma.hbm_to_vmem [thread:$0]  (!%p2404_p11), %s2400_s8, 128, %s2402_s21, %s312_s18  }
  0x65   : > { %331 = sbr.rel (%p2307_p8) target bundleno = 2844 (0xb1c), region = 56  ;;  %s2436_s19 = sand.u32 (!%p2307_p8), 1, %s2174_s22  }
  0x66   : > { %s1592_s15 = sshll.u32 (!%p2307_p8), %s2436_s19, 3  ;;  %s334_s12 = scalar_lea.sflag (!%p2307_p8), [#allocation5], %s2436_s19 }
  0x67   : > { %s337_s14 = scalar_lea.vmem (!%p2307_p8), [#allocation4], %s1592_s15  ;;  %p2688_p4 = scmp.ne.s32.totalorder (!%p2307_p8), %s2679_s27, 0 }
  0x6c   : > { %2151 = dma.done.wait (%p2688_p4), %s334_s12, 128  }
  0x6d   : > { %2153 = vsyncadd (%p2688_p4), %s334_s12, 4294967168  ;;  %p2689_p7 = scmp.eq.s32.totalorder %s2288_s25, 0 }
  0x6f   : > { %2155 = dma.done.wait (%p2689_p7), [#allocation8], 4096   ;;  %p2690_p8 = pmov %p2689_p7 }
  0x70   : > { %v2191_v0 = vmov 0.0   ;;  %v2451_v1 = vld [vmem:[%s337_s14] sm:$0xff]  ;;  %v1916_v4 = vld [vmem:[#allocation7] ss:$12 sps:$4 sm:$0xff]   ;;  %v2192_v22 = vmov 0   ;;  %vm2193_vm0 = vmmov 0  }
  0x71   : > { %2157 = vsyncadd (%p2690_p8), [#allocation8], 4294963200  ;;  %1705 = vmatprep.subr.bf16.mxu1 %v2191_v0  ;;  %384 = vadd.xlane.f32.xlu0 %v2451_v1  ;;  %v387_v2 = vmul.f32 %v2451_v1, %v2451_v1  ;;  %v1914_v3 = vld [vmem:[#allocation7 + $0x4] ss:$12 sps:$4 sm:$0xff]   ;;  %v1917_v5 = vld [vmem:[#allocation7 + $0x8] ss:$12 sps:$4 sm:$0xff]  }
  0x72   : > { %572 = vmatprep.subr.bf16.mxu0 %v1914_v3  ;;  %1706 = vmatpush3.bf16.msra.mxu1 %v1917_v5  ;;  %v1918_v6 = vld [vmem:[#allocation7 + $0x1c] ss:$12 sps:$4 sm:$0xff]   ;;  %v1920_v7 = vld [vmem:[#allocation7 + $0x18] ss:$12 sps:$4 sm:$0xff]   ;;  %v1921_v8 = vld [vmem:[#allocation7 + $0x20] ss:$12 sps:$4 sm:$0xff]  }
  0x73   : > { %573 = vmatpush1.bf16.msra.mxu0 %v1916_v4  ;;  %1707 = vmatprep.subr.bf16.mxu1 %v2191_v0  ;;  %v1922_v9 = vld [vmem:[#allocation7 + $0x34] ss:$12 sps:$4 sm:$0xff]   ;;  %v1924_v10 = vld [vmem:[#allocation7 + $0x30] ss:$12 sps:$4 sm:$0xff]   ;;  %v1925_v11 = vld [vmem:[#allocation7 + $0x38] ss:$12 sps:$4 sm:$0xff]  }
  0x74   : > { %574 = vmatprep.subr.bf16.mxu0 %v1918_v6  ;;  %v1926_v12 = vld [vmem:[#allocation7 + $0x4c] ss:$12 sps:$4 sm:$0xff]   ;;  %v1928_v13 = vld [vmem:[#allocation7 + $0x48] ss:$12 sps:$4 sm:$0xff]   ;;  %v1929_v14 = vld [vmem:[#allocation7 + $0x50] ss:$12 sps:$4 sm:$0xff]   ;;  %604 = vmatprep.mubr.bf16.mxu0 %v2192_v22 }
  0x75   : > { %388 = vadd.xlane.f32.xlu0 %v387_v2  ;;  %v1930_v15 = vld [vmem:[#allocation7 + $0x64] ss:$12 sps:$4 sm:$0xff]   ;;  %v1932_v16 = vld [vmem:[#allocation7 + $0x60] ss:$12 sps:$4 sm:$0xff]   ;;  %v1933_v17 = vld [vmem:[#allocation7 + $0x68] ss:$12 sps:$4 sm:$0xff]   ;;  %1721 = vmatprep.mubr.msk.bf16.mxu1 %vm2193_vm0, %v2191_v0 }
  0x76   : > { %1708 = vmatpush3.bf16.msra.mxu1 %v1921_v8  ;;  %v1934_v18 = vld [vmem:[#allocation7 + $0x7c] ss:$12 sps:$4 sm:$0xff]   ;;  %v1936_v19 = vld [vmem:[#allocation7 + $0x78] ss:$12 sps:$4 sm:$0xff]   ;;  %v1937_v20 = vld [vmem:[#allocation7 + $0x80] ss:$12 sps:$4 sm:$0xff]  }
  0x77   : > { %575 = vmatpush1.bf16.msra.mxu0 %v1920_v7  ;;  %1709 = vmatprep.subr.bf16.mxu1 %v2191_v0  ;;  %v1938_v21 = vld [vmem:[#allocation7 + $0x94] ss:$12 sps:$4 sm:$0xff]   ;;  %v1940_v23 = vld [vmem:[#allocation7 + $0x90] ss:$12 sps:$4 sm:$0xff]   ;;  %v1941_v24 = vld [vmem:[#allocation7 + $0x98] ss:$12 sps:$4 sm:$0xff]  }
  0x78   : > { %576 = vmatprep.subr.bf16.mxu0 %v1922_v9  ;;  %v1942_v25 = vld [vmem:[#allocation7 + $0xac] ss:$12 sps:$4 sm:$0xff]   ;;  %v1944_v26 = vld [vmem:[#allocation7 + $0xa8] ss:$12 sps:$4 sm:$0xff]   ;;  %v1945_v27 = vld [vmem:[#allocation7 + $0xb0] ss:$12 sps:$4 sm:$0xff]  }
  0x79   : > { %v1596_v37 = vld [vmem:[%s2657_s1] ss:$0 sm:$0xff]  ;;  %vm656_vm1 = vcmask 261120   ;;  %s2194_s28 = smov 96   ;;  %s2195_s18 = smov 32   ;;  %vm719_vm2 = vcmask 1043456  }
  0x7a   : > { %1710 = vmatpush3.bf16.msra.mxu1 %v1925_v11  ;;  %v1597_v39 = vld [vmem:[%s2658_s2] ss:$0 sm:$0xff]  ;;  %vm703_vm3 = vcmask 64512   ;;  %s2196_s16 = smov 64   ;;  %vm764_vm4 = vcmask 257024   ;;  %vm886_vm5 = vcmask 519424  }
  0x7b   : > { %577 = vmatpush1.bf16.msra.mxu0 %v1924_v10  ;;  %1711 = vmatprep.subr.bf16.mxu1 %v2191_v0  ;;  %vm1005_vm6 = vcmask 781824   ;;  %vm1124_vm7 = vcmask 1044224   ;;  %s2570_s8 = scalar_lea.vmem [#allocation10], %s1592_s15 }
  0x7c   : > { %578 = vmatprep.subr.bf16.mxu0 %v1926_v12 }
  0x7e   : > { %1712 = vmatpush3.bf16.msra.mxu1 %v1929_v14 }
  0x7f   : > { %579 = vmatpush1.bf16.msra.mxu0 %v1928_v13  ;;  %1713 = vmatprep.subr.bf16.mxu1 %v2191_v0 }
  0x80   : > { %580 = vmatprep.subr.bf16.mxu0 %v1930_v15 }
  0x82   : > { %1714 = vmatpush3.bf16.msra.mxu1 %v1933_v17 }
  0x83   : > { %581 = vmatpush1.bf16.msra.mxu0 %v1932_v16  ;;  %1715 = vmatprep.subr.bf16.mxu1 %v2191_v0 }
  0x84   : > { %582 = vmatprep.subr.bf16.mxu0 %v1934_v18 }
  0x86   : > { %1716 = vmatpush3.bf16.msra.mxu1 %v1937_v20 }
  0x87   : > { %583 = vmatpush1.bf16.msra.mxu0 %v1936_v19  ;;  %1717 = vmatprep.subr.bf16.mxu1 %v2191_v0 }
  0x88   : > { %584 = vmatprep.subr.bf16.mxu0 %v1938_v21 }
  0x8a   : > { %1718 = vmatpush3.bf16.msra.mxu1 %v1941_v24 }
  0x8b   : > { %585 = vmatpush1.bf16.msra.mxu0 %v1940_v23  ;;  %1719 = vmatprep.subr.bf16.mxu1 %v2191_v0 }
  0x8c   : > { %586 = vmatprep.subr.bf16.mxu0 %v1942_v25 }
  0x8e   : > { %1720 = vmatpush3.bf16.msra.mxu1 %v1945_v27 }
  0x8f   : > { %587 = vmatpush1.bf16.msra.mxu0 %v1944_v26  ;;  %1725 = vmatprep.subr.bf16.mxu1 %v2191_v0 }
  0x90   : > { %1749 = vmatprep.subr.bf16.mxu0 %v2191_v0 }
  0xfe   : > { %v385_v28 = vpop.xlane.xlu0 %384 }
  0xff   : > { %v386_v29 = vmul.f32 0.03125, %v385_v28 }
 0x101   : > { %v391_v31 = vmul.f32 %v386_v29, %v386_v29  ;;  %v393_v35 = vsub.f32 %v2451_v1, %v386_v29 }
 0x102   : > { %v389_v30 = vpop.xlane.xlu0 %388 }
 0x103   : > { %v390_v32 = vmul.f32 0.03125, %v389_v30 }
 0x105   : > { %v392_v33 = vsub.f32 %v390_v32, %v391_v31 }
 0x107   : > { %v394_v34 = vadd.f32 1e-05, %v392_v33 }
 0x109   : > { %1954 = vrsqrt.f32 %v394_v34 }
 0x113   : > { %v1955_v36 = vpop.eup %1954 }
 0x114   : > { %v396_v38 = vmul.f32 %v1955_v36, %v393_v35 }
 0x116   : > { %v403_v40 = vmul.f32 %v1596_v37, %v396_v38 }
 0x118   : > { %v410_v41 = vadd.f32 %v1597_v39, %v403_v40 }
 0x11a   : > { %v411_v42 = vpack.c.bf16 %v410_v41, %v410_v41 }
 0x11c   : > { %605 = vmatmul.mubr.bf16.vlgmr.msra.gmra.mrb[0].mxu0 %v411_v42  ;;  %1722 = vmatmul.mubr.bf16.vlgmr.msra.gmra.mrb[0].mxu1 %v411_v42 }
 0x11d   : > { %1727 = vmatprep.mubr.msk.bf16.mxu1 %vm2193_vm0, %v2191_v0  ;;  %1751 = vmatprep.mubr.msk.bf16.mxu0 %vm2193_vm0, %v2191_v0 }
 0x1ef   : > { %v606_v43 = vpop.f32.mrb[0].mxu0  ;;  %v647_v44 = vpop.f32.mrb[0].mxu1 }
 0x1f0   : > { %v608_v45 = vpop.f32.mrb[1].mxu0  ;;  %v1723_v46 = vpop.f32.mrb[1].mxu1  ;;  %v2481_v53 = vpack.c.bf16 %v647_v44, %v647_v44  ;;  %v653_v54 = vpack.c.bf16 %v606_v43, %v606_v43 }
 0x1f1   : > { %v654_v47 = vpack.c.bf16 %v608_v45, %v608_v45  ;;  %v610_v48 = vpop.f32.mrb[2].mxu0  ;;  %v650_v49 = vpop.f32.mrb[2].mxu1 }
 0x1f2   : > { %v611_v50 = vpop.f32.mrb[3].mxu0  ;;  %v1724_v51 = vpop.f32.mrb[3].mxu1  ;;  %v721_v55 = vsel %vm719_vm2, %v2481_v53, 0 }
 0x1f3   : > { %770 = vrot.lane.b32.xlu0 %v654_v47, %s2194_s28  ;;  %v661_v52 = vsel %vm656_vm1, %v654_v47, 0 }
 0x1f4   : > { %1726 = vmatpush3.bf16.xpose.msra.mxu1 %v661_v52 }
 0x1f5   : > { %1731 = vmatprep.subr.bf16.mxu1 %v2191_v0 }
 0x1f7   : > { %1009 = vrot.lane.b32.xlu0 %v654_v47, %s2195_s18 }
 0x1fb   : > { %1728 = vmatmul.mubr.msk.bf16.vlgmr.msra.gmra.mrb[4].mxu1 %vm656_vm1, %v653_v54 }
 0x1fc   : > { %1732 = vmatpush3.bf16.msra.mxu1 %v721_v55  ;;  %1733 = vmatprep.mubr.msk.bf16.mxu1 %vm2193_vm0, %v2191_v0 }
 0x1fd   : > { %1737 = vmatprep.subr.bf16.mxu1 %v2191_v0 }
 0x265   : > { %v771_v6 = vpop.permute.xlu0 %770 }
 0x266   : > { %v776_v13 = vsel %vm656_vm1, %v771_v6, 0 }
 0x269   : > { %v1010_v11 = vpop.permute.xlu0 %1009 }
 0x26a   : > { %v1015_v15 = vsel %vm656_vm1, %v1010_v11, 0  ;;  %v1949_v11 = vld [vmem:[#allocation9 + $0x18] sm:$0xff]  }
 0x2ce   : > { %v697_v56 = vpop.f32.mrb[4].mxu1 }
 0x2cf   : > { %v1729_v57 = vpop.f32.mrb[5].mxu1  ;;  %v704_v58 = vsel %vm703_vm3, %v697_v56, -inf }
 0x2d0   : > { %705 = vmax.xlane.f32.xlu1 %v704_v58  ;;  %v700_v59 = vpop.f32.mrb[6].mxu1 }
 0x2d1   : > { %v1730_v60 = vpop.f32.mrb[7].mxu1 }
 0x35d   : > { %v706_v61 = vpop.xlane.xlu1 %705 }
 0x35e   : > { %v707_v62 = vsub.f32 %v697_v56, %v706_v61 }
 0x360   : > { %v708_v63 = vmul.f32 1.442695, %v707_v62 }
 0x362   : > { %1956 = vpow2.f32 %v708_v63 }
 0x36c   : > { %v1957_v2 = vpop.eup %1956 }
 0x36d   : > { %v710_v3 = vsel %vm703_vm3, %v1957_v2, 0.0 }
 0x36e   : > { %711 = vadd.xlane.f32.xlu1 %v710_v3 }
 0x37f   : > { %767 = vrot.lane.b32.xlu1 %v653_v54, %s2194_s28 }
 0x383   : > { %890 = vrot.lane.b32.xlu1 %v654_v47, %s2196_s16 }
 0x387   : > { %888 = vrot.lane.b32.xlu1 %v653_v54, %s2196_s16 }
 0x38b   : > { %1007 = vrot.lane.b32.xlu1 %v653_v54, %s2195_s18 }
 0x3fb   : > { %v712_v4 = vpop.xlane.xlu1 %711 }
 0x3fc   : > { %1958 = vrcp.f32 %v712_v4 }
 0x3ff   : > { %v768_v5 = vpop.permute.xlu1 %767 }
 0x403   : > { %v891_v7 = vpop.permute.xlu1 %890 }
 0x404   : > { %v896_v8 = vsel %vm656_vm1, %v891_v7, 0 }
 0x405   : > { %1750 = vmatpush3.bf16.xpose.msra.mxu0 %v896_v8  ;;  %v1946_v8 = vld [vmem:[#allocation9] sm:$0xff]  }
 0x406   : > { %v1959_v9 = vpop.eup %1958  ;;  %1761 = vmatprep.subr.bf16.mxu0 %v2191_v0 }
 0x407   : > { %v714_v10 = vmul.f32 %v1959_v9, %v1957_v2  ;;  %v889_v14 = vpop.permute.xlu1 %888  ;;  %v1947_v9 = vld [vmem:[#allocation9 + $0x8] sm:$0xff]  }
 0x409   : > { %v715_v12 = vpack.c.bf16 %v714_v10, %v714_v10  ;;  %v1948_v10 = vld [vmem:[#allocation9 + $0x10] sm:$0xff]  }
 0x40b   : > { %1734 = vmatmul.mubr.msk.bf16.vlgmr.msra.gmra.mrb[8].mxu1 %vm703_vm3, %v715_v12  ;;  %v1008_v16 = vpop.permute.xlu1 %1007  ;;  %v1950_v12 = vld [vmem:[#allocation9 + $0x20] sm:$0xff]  }
 0x40c   : > { %1738 = vmatpush3.bf16.xpose.msra.mxu1 %v776_v13  ;;  %1752 = vmatmul.mubr.msk.bf16.vlgmr.msra.gmra.mrb[4].mxu0 %vm656_vm1, %v889_v14  ;;  %v1951_v14 = vld [vmem:[#allocation9 + $0x28] sm:$0xff]  }
 0x40d   : > { %1762 = vmatpush3.bf16.xpose.msra.mxu0 %v1015_v15  ;;  %1739 = vmatprep.mubr.msk.bf16.mxu1 %vm2193_vm0, %v2191_v0 }
 0x40e   : > { %1763 = vmatprep.mubr.msk.bf16.mxu0 %vm2193_vm0, %v2191_v0  ;;  %1743 = vmatprep.subr.bf16.mxu1 %v2191_v0 }
 0x40f   : > { %1773 = vmatprep.subr.bf16.mxu0 %v2191_v0 }
 0x413   : > { %1740 = vmatmul.mubr.msk.bf16.vlgmr.msra.gmra.mrb[12].mxu1 %vm656_vm1, %v768_v5 }
 0x414   : > { %1764 = vmatmul.mubr.msk.bf16.vlgmr.msra.gmra.mrb[8].mxu0 %vm656_vm1, %v1008_v16  ;;  %1745 = vmatprep.mubr.msk.bf16.mxu1 %vm2193_vm0, %v2191_v0 }
 0x415   : > { %1789 = vmatprep.mubr.msk.bf16.mxu0 %vm2193_vm0, %v2191_v0  ;;  %1774 = vmatpush3.bf16.msra.mxu0 %v1946_v8 }
 0x416   : > { %1775 = vmatprep.subr.bf16.mxu0 %v2191_v0 }
 0x419   : > { %1776 = vmatpush3.bf16.msra.mxu0 %v1947_v9 }
 0x41a   : > { %1777 = vmatprep.subr.bf16.mxu0 %v2191_v0 }
 0x41d   : > { %1778 = vmatpush3.bf16.msra.mxu0 %v1948_v10 }
 0x41e   : > { %1779 = vmatprep.subr.bf16.mxu0 %v2191_v0 }
 0x421   : > { %1780 = vmatpush3.bf16.msra.mxu0 %v1949_v11 }
 0x422   : > { %1781 = vmatprep.subr.bf16.mxu0 %v2191_v0 }
 0x425   : > { %1782 = vmatpush3.bf16.msra.mxu0 %v1950_v12 }
 0x426   : > { %1783 = vmatprep.subr.bf16.mxu0 %v2191_v0 }
 0x429   : > { %1784 = vmatpush3.bf16.msra.mxu0 %v1951_v14 }
 0x42a   : > { %1785 = vmatprep.subr.bf16.mxu0 %v2191_v0 }
 0x4de   : > { %v757_v17 = vpop.f32.mrb[8].mxu1 }
 0x4df   : > { %v763_v18 = vpack.c.bf16 %v757_v17, %v757_v17  ;;  %v1735_v19 = vpop.f32.mrb[9].mxu1  ;;  %v932_v20 = vpop.f32.mrb[4].mxu0 }
 0x4e0   : > { %v760_v21 = vpop.f32.mrb[10].mxu1  ;;  %v1753_v22 = vpop.f32.mrb[5].mxu0  ;;  %v938_v23 = vsel %vm703_vm3, %v932_v20, -inf  ;;  %v1952_v19 = vld [vmem:[#allocation9 + $0x30] sm:$0xff]  }
 0x4e1   : > { %765 = vst.msk [vmem:[#allocation2] sm:$0xf] %vm764_vm4, %v763_v18  ;;  %v1736_v24 = vpop.f32.mrb[11].mxu1  ;;  %939 = vmax.xlane.f32.xlu1 %v938_v23  ;;  %v935_v25 = vpop.f32.mrb[6].mxu0  ;;  %1786 = vmatpush3.bf16.msra.mxu0 %v1952_v19  ;;  %v1953_v21 = vld [vmem:[#allocation9 + $0x38] sm:$0xff]  }
 0x4e2   : > { %v1754_v26 = vpop.f32.mrb[7].mxu0  ;;  %1787 = vmatprep.subr.bf16.mxu0 %v2191_v0 }
 0x4e5   : > { %1788 = vmatpush3.bf16.msra.mxu0 %v1953_v21 }
 0x4e6   : > { %v812_v27 = vpop.f32.mrb[12].mxu1 }
 0x4e7   : > { %v1741_v28 = vpop.f32.mrb[13].mxu1  ;;  %v1051_v29 = vpop.f32.mrb[8].mxu0  ;;  %v818_v30 = vsel %vm703_vm3, %v812_v27, -inf }
 0x4e8   : > { %819 = vmax.xlane.f32.xlu0 %v818_v30  ;;  %v815_v31 = vpop.f32.mrb[14].mxu1  ;;  %v1765_v32 = vpop.f32.mrb[9].mxu0  ;;  %v1057_v36 = vsel %vm703_vm3, %v1051_v29, -inf }
 0x4e9   : > { %v1742_v33 = vpop.f32.mrb[15].mxu1  ;;  %v1054_v34 = vpop.f32.mrb[10].mxu0 }
 0x4ea   : > { %v1766_v35 = vpop.f32.mrb[11].mxu0 }
 0x4eb   : > { %v1641_v35 = vld [vmem:[%s2661_s5] ss:$0 sm:$0xff] }
 0x4ec   : > { %1058 = vmax.xlane.f32.xlu0 %v1057_v36 }
 0x56e   : > { %v940_v37 = vpop.xlane.xlu1 %939 }
 0x56f   : > { %v941_v38 = vsub.f32 %v932_v20, %v940_v37 }
 0x571   : > { %v942_v39 = vmul.f32 1.442695, %v941_v38 }
 0x573   : > { %1960 = vpow2.f32 %v942_v39 }
 0x575   : > { %v820_v40 = vpop.xlane.xlu0 %819 }
 0x576   : > { %v821_v41 = vsub.f32 %v812_v27, %v820_v40 }
 0x578   : > { %v822_v42 = vmul.f32 1.442695, %v821_v41 }
 0x579   : > { %v1059_v43 = vpop.xlane.xlu0 %1058 }
 0x57a   : > { %1962 = vpow2.f32 %v822_v42  ;;  %v1060_v44 = vsub.f32 %v1051_v29, %v1059_v43 }
 0x57c   : > { %v1061_v45 = vmul.f32 1.442695, %v1060_v44 }
 0x57d   : > { %v1961_v46 = vpop.eup %1960 }
 0x57e   : > { %1964 = vpow2.f32 %v1061_v45  ;;  %v944_v47 = vsel %vm703_vm3, %v1961_v46, 0.0 }
 0x57f   : > { %945 = vadd.xlane.f32.xlu0 %v944_v47 }
 0x584   : > { %v1963_v48 = vpop.eup %1962 }
 0x585   : > { %v824_v49 = vsel %vm703_vm3, %v1963_v48, 0.0 }
 0x586   : > { %825 = vadd.xlane.f32.xlu0 %v824_v49 }
 0x588   : > { %v1965_v50 = vpop.eup %1964 }
 0x589   : > { %v1063_v51 = vsel %vm703_vm3, %v1965_v50, 0.0 }
 0x58a   : > { %1064 = vadd.xlane.f32.xlu1 %v1063_v51 }
 0x59b   : > { %950 = vrot.lane.b32.xlu1 %v2481_v53, %s2196_s16 }
 0x59c   : > { %831 = vrot.lane.b32.xlu0 %v2481_v53, %s2194_s28 }
 0x59f   : > { %1069 = vrot.lane.b32.xlu1 %v2481_v53, %s2195_s18 }
 0x60c   : > { %v946_v52 = vpop.xlane.xlu0 %945 }
 0x613   : > { %v826_v54 = vpop.xlane.xlu0 %825 }
 0x614   : > { %1966 = vrcp.f32 %v826_v54 }
 0x615   : > { %1968 = vrcp.f32 %v946_v52  ;;  %v1643_v52 = vld [vmem:[%s2663_s7] ss:$0 sm:$0xff] }
 0x617   : > { %v832_v55 = vpop.permute.xlu0 %831  ;;  %v1065_v57 = vpop.xlane.xlu1 %1064 }
 0x618   : > { %v837_v56 = vsel %vm719_vm2, %v832_v55, 0  ;;  %1970 = vrcp.f32 %v1065_v57 }
 0x619   : > { %1744 = vmatpush3.bf16.msra.mxu1 %v837_v56 }
 0x61a   : > { %1755 = vmatprep.subr.bf16.mxu1 %v2191_v0 }
 0x61b   : > { %v951_v60 = vpop.permute.xlu1 %950 }
 0x61c   : > { %v956_v63 = vsel %vm719_vm2, %v951_v60, 0 }
 0x61e   : > { %v1967_v58 = vpop.eup %1966 }
 0x61f   : > { %v828_v59 = vmul.f32 %v1967_v58, %v1963_v48  ;;  %v1969_v62 = vpop.eup %1968  ;;  %v1070_v2 = vpop.permute.xlu1 %1069 }
 0x620   : > { %v948_v53 = vmul.f32 %v1969_v62, %v1961_v46  ;;  %v1075_v5 = vsel %vm719_vm2, %v1070_v2, 0 }
 0x621   : > { %v829_v61 = vpack.c.bf16 %v828_v59, %v828_v59 }
 0x622   : > { %v949_v3 = vpack.c.bf16 %v948_v53, %v948_v53  ;;  %v1971_v4 = vpop.eup %1970 }
 0x623   : > { %1746 = vmatmul.mubr.msk.bf16.vlgmr.msra.gmra.mrb[16].mxu1 %vm703_vm3, %v829_v61  ;;  %v1067_v6 = vmul.f32 %v1971_v4, %v1965_v50  ;;  %v1642_v50 = vld [vmem:[%s2662_s6] ss:$0 sm:$0xff] }
 0x624   : > { %1756 = vmatpush3.bf16.msra.mxu1 %v956_v63  ;;  %1757 = vmatprep.mubr.msk.bf16.mxu1 %vm2193_vm0, %v2191_v0 }
 0x625   : > { %1767 = vmatprep.subr.bf16.mxu1 %v2191_v0  ;;  %v1068_v7 = vpack.c.bf16 %v1067_v6, %v1067_v6 }
 0x62b   : > { %1758 = vmatmul.mubr.msk.bf16.vlgmr.msra.gmra.mrb[20].mxu1 %vm703_vm3, %v949_v3 }
 0x62c   : > { %1768 = vmatpush3.bf16.msra.mxu1 %v1075_v5  ;;  %1769 = vmatprep.mubr.msk.bf16.mxu1 %vm2193_vm0, %v2191_v0 }
 0x633   : > { %1770 = vmatmul.mubr.msk.bf16.vlgmr.msra.gmra.mrb[24].mxu1 %vm703_vm3, %v1068_v7 }
 0x6f6   : > { %v873_v13 = vpop.f32.mrb[16].mxu1 }
 0x6f7   : > { %v1650_v15 = vpack.c.bf16 %v873_v13, %v873_v13  ;;  %v1747_v16 = vpop.f32.mrb[17].mxu1 }
 0x6f8   : > { %v876_v17 = vpop.f32.mrb[18].mxu1 }
 0x6f9   : > { %883 = vrot.lane.b32.xlu1 %v1650_v15, %s2195_s18  ;;  %v1748_v18 = vpop.f32.mrb[19].mxu1 }
 0x6fe   : > { %v992_v20 = vpop.f32.mrb[20].mxu1 }
 0x6ff   : > { %v1651_v22 = vpack.c.bf16 %v992_v20, %v992_v20  ;;  %v1759_v23 = vpop.f32.mrb[21].mxu1 }
 0x700   : > { %v995_v24 = vpop.f32.mrb[22].mxu1 }
 0x701   : > { %1002 = vrot.lane.b32.xlu0 %v1651_v22, %s2196_s16  ;;  %v1760_v25 = vpop.f32.mrb[23].mxu1 }
 0x706   : > { %v1111_v26 = vpop.f32.mrb[24].mxu1 }
 0x707   : > { %v1652_v27 = vpack.c.bf16 %v1111_v26, %v1111_v26  ;;  %v1771_v28 = vpop.f32.mrb[25].mxu1 }
 0x708   : > { %v1114_v29 = vpop.f32.mrb[26].mxu1 }
 0x709   : > { %1121 = vrot.lane.b32.xlu1 %v1652_v27, %s2194_s28  ;;  %v1772_v30 = vpop.f32.mrb[27].mxu1 }
 0x76b   : > { %v884_v31 = vpop.permute.xlu1 %883 }
 0x76c   : > { %887 = vst.msk [vmem:[#allocation2] sm:$0xf] %vm886_vm5, %v884_v31 }
 0x773   : > { %v1003_v32 = vpop.permute.xlu0 %1002 }
 0x774   : > { %1006 = vst.msk [vmem:[#allocation2] sm:$0xf] %vm1005_vm6, %v1003_v32 }
 0x77b   : > { %v1122_v0 = vpop.permute.xlu1 %1121 }
 0x77c   : > { %1125 = vst.msk [vmem:[#allocation2] sm:$0xf] %vm1124_vm7, %v1122_v0 }
 0x783   : > { %v1126_v33 = vld [vmem:[#allocation2] sm:$0xf] }
 0x784   : > { %1790 = vmatmul.mubr.bf16.vlgmr.msra.gmra.mrb[12].mxu0 %v1126_v33 }
 0x857   : > { %v1225_v34 = vpop.f32.mrb[12].mxu0 }
 0x858   : > { %v1231_v36 = vadd.f32 %v1225_v34, %v2451_v1  ;;  %v1791_v37 = vpop.f32.mrb[13].mxu0 }
 0x859   : > { %v1228_v38 = vpop.f32.mrb[14].mxu0 }
 0x85a   : > { %v2552_v39 = vadd.f32 %v1641_v35, %v1231_v36  ;;  %v1792_v40 = vpop.f32.mrb[15].mxu0 }
 0x85c   : > { %1242 = vadd.xlane.f32.xlu0 %v2552_v39  ;;  %v1245_v41 = vmul.f32 %v2552_v39, %v2552_v39 }
 0x85e   : > { %1246 = vadd.xlane.f32.xlu1 %v1245_v41 }
 0x8e9   : > { %v1243_v42 = vpop.xlane.xlu0 %1242 }
 0x8ea   : > { %v1244_v43 = vmul.f32 0.03125, %v1243_v42 }
 0x8eb   : > { %v1247_v44 = vpop.xlane.xlu1 %1246 }
 0x8ec   : > { %v1249_v45 = vmul.f32 %v1244_v43, %v1244_v43  ;;  %v1248_v46 = vmul.f32 0.03125, %v1247_v44  ;;  %v1251_v1 = vsub.f32 %v2552_v39, %v1244_v43 }
 0x8ee   : > { %v1250_v47 = vsub.f32 %v1248_v46, %v1249_v45 }
 0x8f0   : > { %v1252_v48 = vadd.f32 1e-05, %v1250_v47 }
 0x8f2   : > { %1972 = vrsqrt.f32 %v1252_v48 }
 0x8fc   : > { %v1973_v49 = vpop.eup %1972 }
 0x8fd   : > { %v1254_v51 = vmul.f32 %v1973_v49, %v1251_v1 }
 0x8ff   : > { %v1261_v54 = vmul.f32 %v1642_v50, %v1254_v51 }
 0x901   : > { %v2564_v55 = vadd.f32 %v1643_v52, %v1261_v54 }
 0x903   : > { %v1269_v56 = vpack.c.bf16 %v2564_v55, %v2564_v55 }
 0x904   : > { %s2197_s21 = smov [#allocation11]   ;;  %s2062_s30 = scalar_lea.hbm %s2665_s9, 1024 }
 0x905   : > { %s1278_s28 = sshll.u32 %s2197_s21, 4  ;;  %p2063_p11 = scmp.ne.s32.totalorder %s2665_s9, %s2062_s30  ;;  %s1279_s28 = int_to_ptr.vmem [resolvable:$true] %s1278_s28 }
 0x906   : > { %p2066_p0 = scmp.lt.u32.totalorder %s2062_s30, %s2665_s9 }
 0x908   : > { %p2068_p1 = pnand %p2066_p0, %p2063_p11 }
 0x90a   : > { %2071 = shalt.err (!%p2068_p1)  }
 0x90b   : > { %s2072_s29 = scalar_lea.vmem %s1279_s28, 1024  ;;  %p2077_p5 = scmp.lt.s32.totalorder %s1279_s28, %s1279_s28 }
 0x90c   : > { %p2073_p3 = scmp.ne.s32.totalorder %s1279_s28, %s2072_s29  ;;  %p2078_p9 = scmp.lt.s32.totalorder %s2072_s29, %s2072_s29 }
 0x90e   : > { %p2079_p12 = por %p2078_p9, %p2077_p5 }
 0x910   : > { %p2080_p2 = pnand %p2079_p12, %p2073_p3 }
 0x912   : > { %2083 = shalt.err (!%p2080_p2)  }
 0x913   : > { %1281 = dma.hbm_to_vmem [thread:$0]  %s2665_s9, 1024, %s1279_s28, [#allocation14] }
 0x914   : > { %2158 = dma.done.wait [#allocation14], 1024 }
 0x915   : > { %2159 = vsyncadd [#allocation14], 4294966272 }
 0x916   : > { %v1303_v57 = vld [vmem:[%s2666_s10] sm:$0x1] }
 0x917   : > { %1304 = vst [vmem:[#allocation12] sm:$0x1] %v1303_v57 }
 0x918   : > { %1329 = vsyncadd [#allocation19], 16 }
 0x919   : > { %2160 = dma.done.wait [#allocation19], 16 }
 0x91a   : > { %2161 = vsyncadd [#allocation19], 4294967280 }
 0x91b   : > { %s2198_s30 = smov [#allocation13]   ;;  %s2084_s27 = scalar_lea.hbm %s2667_s11, 1024 }
 0x91c   : > { %s1340_s13 = sshll.u32 %s2198_s30, 4  ;;  %p2085_p13 = scmp.ne.s32.totalorder %s2667_s11, %s2084_s27  ;;  %s1341_s13 = int_to_ptr.vmem [resolvable:$true] %s1340_s13 }
 0x91d   : > { %p2088_p6 = scmp.lt.u32.totalorder %s2084_s27, %s2667_s11 }
 0x91f   : > { %p2090_p10 = pnand %p2088_p6, %p2085_p13 }
 0x921   : > { %2093 = shalt.err (!%p2090_p10)  }
 0x922   : > { %s2094_s18 = scalar_lea.vmem %s1341_s13, 1024  ;;  %p2099_p7 = scmp.lt.s32.totalorder %s1341_s13, %s1341_s13 }
 0x923   : > { %p2095_p4 = scmp.ne.s32.totalorder %s1341_s13, %s2094_s18  ;;  %p2100_p8 = scmp.lt.s32.totalorder %s2094_s18, %s2094_s18 }
 0x925   : > { %p2101_p11 = por %p2100_p8, %p2099_p7 }
 0x927   : > { %p2102_p0 = pnand %p2101_p11, %p2095_p4 }
 0x929   : > { %2105 = shalt.err (!%p2102_p0)  }
 0x92a   : > { %1343 = dma.hbm_to_vmem [thread:$0]  %s2667_s11, 1024, %s1341_s13, [#allocation21] }
 0x92b   : > { %2162 = dma.done.wait [#allocation21], 1024 }
 0x92c   : > { %2163 = vsyncadd [#allocation21], 4294966272  ;;  %v1348_v58 = vld [vmem:[#allocation11] sm:$0xff]  ;;  %v2199_v59 = vmov 0.0   ;;  %vm2200_vm8 = vmmov 0   ;;  %v1349_v61 = vld [vmem:[#allocation11 + $0x8] sm:$0xff] }
 0x92d   : > { %1793 = vmatprep.subr.bf16.mxu1 %v2199_v59  ;;  %1809 = vmatprep.mubr.msk.bf16.mxu1 %vm2200_vm8, %v2199_v59  ;;  %v1410_v60 = vld [vmem:[#allocation13] sm:$0xff]  ;;  %v1411_v62 = vld [vmem:[#allocation13 + $0x8] sm:$0xff]  ;;  %v1412_v53 = vld [vmem:[#allocation13 + $0x10] sm:$0xff]  ;;  %s2691_s14 = sld [smem:[#allocation33_spill]]  ;;  %s1647_s27 = sshll.u32 %s2288_s25, 7 }
 0x92e   : > { %1794 = vmatpush3.bf16.msra.mxu1 %v1348_v58  ;;  %1813 = vmatprep.subr.bf16.mxu0 %v2199_v59  ;;  %v1350_v63 = vld [vmem:[#allocation11 + $0x10] sm:$0xff]  ;;  %v1351_v2 = vld [vmem:[#allocation11 + $0x18] sm:$0xff]  ;;  %v1352_v3 = vld [vmem:[#allocation11 + $0x20] sm:$0xff]  ;;  %s1485_s29 = sshll.u32 %s2570_s8, 4  ;;  %s2692_s21 = sld [smem:[#allocation34_spill]]  ;;  %s2613_s29 = int_to_ptr.vmem [resolvable:$true] %s1485_s29 }
 0x92f   : > { %1795 = vmatprep.subr.bf16.mxu1 %v2199_v59  ;;  %1814 = vmatpush3.bf16.msra.mxu0 %v1410_v60  ;;  %v1353_v4 = vld [vmem:[#allocation11 + $0x28] sm:$0xff]  ;;  %v1354_v5 = vld [vmem:[#allocation11 + $0x30] sm:$0xff]  ;;  %v1355_v6 = vld [vmem:[#allocation11 + $0x38] sm:$0xff]  ;;  %s1472_s30 = scalar_lea.sflag [#allocation6], %s2436_s19  ;;  %s2106_s0 = scalar_lea.vmem %s2613_s29, 128 }
 0x930   : > { %1815 = vmatprep.subr.bf16.mxu0 %v2199_v59  ;;  %1829 = vmatprep.mubr.msk.bf16.mxu0 %vm2200_vm8, %v2199_v59  ;;  %v1413_v7 = vld [vmem:[#allocation13 + $0x18] sm:$0xff]  ;;  %v1414_v8 = vld [vmem:[#allocation13 + $0x20] sm:$0xff]  ;;  %v1415_v9 = vld [vmem:[#allocation13 + $0x28] sm:$0xff]  ;;  %p2107_p1 = scmp.ne.s32.totalorder %s2613_s29, %s2106_s0  ;;  %p2694_p3 = scmp.ne.s32.totalorder %s2685_s26, 0 }
 0x931   : > { %v1416_v10 = vld [vmem:[#allocation13 + $0x30] sm:$0xff]  ;;  %v1417_v11 = vld [vmem:[#allocation13 + $0x38] sm:$0xff]  ;;  %s2201_s25 = smov [#allocation10]  }
 0x932   : > { %1796 = vmatpush3.bf16.msra.mxu1 %v1349_v61  ;;  %v1644_v12 = vld [vmem:[#allocation12] ss:$0 sm:$0xff]  ;;  %p2108_p5 = pnand %p2107_p1, %p2694_p3  ;;  %s2110_s13 = sshll.u32 %s2201_s25, 4  ;;  %s2111_s13 = int_to_ptr.vmem [resolvable:$false] %s2110_s13 }
 0x933   : > { %1797 = vmatprep.subr.bf16.mxu1 %v2199_v59  ;;  %1816 = vmatpush3.bf16.msra.mxu0 %v1411_v62  ;;  %v1645_v29 = vld [vmem:[%s2691_s14] ss:$0 sm:$0xff]  ;;  %s2112_s12 = scalar_lea.vmem %s2111_s13, 256  ;;  %p2113_p12 = scmp.lt.s32.totalorder %s2613_s29, %s2111_s13 }
 0x934   : > { %1817 = vmatprep.subr.bf16.mxu0 %v2199_v59  ;;  %s2693_s18 = smov %s2692_s21  ;;  %s2611_s16 = scalar_lea.hbm %s2692_s21, %s1647_s27 }
 0x935   : > { %p2109_p9 = pneg %p2108_p5  ;;  %p2114_p2 = scmp.lt.s32.totalorder %s2112_s12, %s2106_s0 }
 0x936   : > { %1798 = vmatpush3.bf16.msra.mxu1 %v1350_v63 }
 0x937   : > { %1799 = vmatprep.subr.bf16.mxu1 %v2199_v59  ;;  %1818 = vmatpush3.bf16.msra.mxu0 %v1412_v53  ;;  %p2115_p13 = por %p2114_p2, %p2113_p12 }
 0x938   : > { %1819 = vmatprep.subr.bf16.mxu0 %v2199_v59 }
 0x939   : > { %p2116_p6 = pnand %p2115_p13, %p2109_p9 }
 0x93a   : > { %1800 = vmatpush3.bf16.msra.mxu1 %v1351_v2 }
 0x93b   : > { %1801 = vmatprep.subr.bf16.mxu1 %v2199_v59  ;;  %1820 = vmatpush3.bf16.msra.mxu0 %v1413_v7 }
 0x93c   : > { %1821 = vmatprep.subr.bf16.mxu0 %v2199_v59 }
 0x93e   : > { %1802 = vmatpush3.bf16.msra.mxu1 %v1352_v3 }
 0x93f   : > { %1803 = vmatprep.subr.bf16.mxu1 %v2199_v59  ;;  %1822 = vmatpush3.bf16.msra.mxu0 %v1414_v8 }
 0x940   : > { %1823 = vmatprep.subr.bf16.mxu0 %v2199_v59 }
 0x942   : > { %1804 = vmatpush3.bf16.msra.mxu1 %v1353_v4 }
 0x943   : > { %1805 = vmatprep.subr.bf16.mxu1 %v2199_v59  ;;  %1824 = vmatpush3.bf16.msra.mxu0 %v1415_v9 }
 0x944   : > { %1825 = vmatprep.subr.bf16.mxu0 %v2199_v59 }
 0x946   : > { %1806 = vmatpush3.bf16.msra.mxu1 %v1354_v5 }
 0x947   : > { %1807 = vmatprep.subr.bf16.mxu1 %v2199_v59  ;;  %1826 = vmatpush3.bf16.msra.mxu0 %v1416_v10 }
 0x948   : > { %1827 = vmatprep.subr.bf16.mxu0 %v2199_v59 }
 0x94a   : > { %1808 = vmatpush3.bf16.msra.mxu1 %v1355_v6 }
 0x94b   : > { %1828 = vmatpush3.bf16.msra.mxu0 %v1417_v11 }
 0x94d   : > { %1810 = vmatmul.mubr.bf16.vlgmr.msra.gmra.mrb[28].mxu1 %v1269_v56 }
 0xa20   : > { %v1397_v13 = vpop.f32.mrb[28].mxu1 }
 0xa21   : > { %v1398_v14 = vadd.f32 %v1644_v12, %v1397_v13  ;;  %v1811_v15 = vpop.f32.mrb[29].mxu1 }
 0xa22   : > { %v1400_v16 = vpop.f32.mrb[30].mxu1 }
 0xa23   : > { %v1404_v17 = vmul.f32 0.70710677, %v1398_v14  ;;  %v1812_v18 = vpop.f32.mrb[31].mxu1  ;;  %v1403_v20 = vmul.f32 0.5, %v1398_v14 }
 0xa25   : > { %1974 = verf.f32 %v1404_v17 }
 0xa2f   : > { %v1975_v19 = vpop.eup %1974 }
 0xa30   : > { %v1406_v21 = vadd.f32 1.0, %v1975_v19 }
 0xa32   : > { %v1407_v22 = vmul.f32 %v1406_v21, %v1403_v20 }
 0xa34   : > { %v1409_v23 = vpack.c.bf16 %v1407_v22, %v1407_v22 }
 0xa36   : > { %1830 = vmatmul.mubr.bf16.vlgmr.msra.gmra.mrb[16].mxu0 %v1409_v23 }
 0xb09   : > { %v1452_v24 = vpop.f32.mrb[16].mxu0 }
 0xb0a   : > { %v1831_v25 = vpop.f32.mrb[17].mxu0  ;;  %v1461_v28 = vadd.f32 %v1452_v24, %v2552_v39 }
 0xb0b   : > { %v1455_v26 = vpop.f32.mrb[18].mxu0 }
 0xb0c   : > { %v1832_v27 = vpop.f32.mrb[19].mxu0  ;;  %v1469_v30 = vadd.f32 %v1645_v29, %v1461_v28 }
 0xb0e   : > { %1470 = vst [vmem:[%s2570_s8] sm:$0xff] %v1469_v30 }
 0xb0f   : > { %2119 = shalt.err (!%p2116_p6)
}
 0xb10   : > { %s2120_s19 = scalar_lea.hbm %s2611_s16, 128  ;;  %s2124_s27 = scalar_lea.hbm %s2693_s18, 256 }
 0xb11   : > { %p2121_p10 = scmp.ne.s32.totalorder %s2611_s16, %s2120_s19  ;;  %p2125_p8 = scmp.lt.u32.totalorder %s2611_s16, %s2693_s18 }
 0xb12   : > { %p2126_p11 = scmp.lt.u32.totalorder %s2124_s27, %s2120_s19  ;;  %p2128_p1 = scmp.lt.u32.totalorder %s2120_s19, %s2611_s16 }
 0xb13   : > { %p2122_p4 = pnand %p2121_p10, %p2694_p3 }
 0xb14   : > { %p2127_p0 = por %p2126_p11, %p2125_p8 }
 0xb15   : > { %p2123_p7 = pneg %p2122_p4 }
 0xb16   : > { %p2129_p5 = por %p2128_p1, %p2127_p0 }
 0xb18   : > { %p2130_p9 = pnand %p2129_p5, %p2123_p7 }
 0xb1a   : > { %2133 = shalt.err (!%p2130_p9)
}
 0xb1b   : > { %1843 = dma.vmem_to_hbm [thread:$0]  (%p2694_p3), %s2613_s29, 128, %s2611_s16, %s1472_s30  }
 0xb1c PF: > { %s2695_s0 = sld [smem:[#allocation30_spill]]  ;;  %s2696_s21 = sld [smem:[#allocation31_spill]] }
 0xb1d   : > { %p2698_p2 = scmp.ge.s32.totalorder %s2182_s24, 2 }
 0xb22   : > { %s1497_s25 = sand.u32 1, %s2695_s0   ;;  %p2697_p12 = scmp.ne.s32.totalorder %s2696_s21, 0 }
 0xb23   : > { %s1498_s13 = scalar_lea.sflag [#allocation6], %s1497_s25 }
 0xb24   : > { %p1857_p13 = pnand %p2698_p2, %p2697_p12 }
 0xb26   : > { %2165 = dma.done.wait (!%p1857_p13), %s1498_s13, 128  }
 0xb27   : > { %2167 = vsyncadd (!%p1857_p13), %s1498_s13, 4294967168  ;;  %p26_p6 = scmp.ge.s32.totalorder %s2377_s17, 4   ;;  %s2699_s21 = smov %s2174_s22 }
 0xb28   : > { %s2700_s22 = smov %s2178_s23  ;;  %s2701_s23 = smov %s2386_s20 }
 0xb29   : > { %s2702_s24 = smov %s2377_s17  ;;  %28 = sbr.rel (!%p26_p6) target bundleno = 10 (0xa), region = 161 }
 0xb30   :  { %1503 = vsyncpa [#allocation5], 1 }
 0xb31   :  { %1505 = vsyncpa [#allocation5 + $0x1], 1 }
 0xb32   :  { %1506 = vsyncpa [#allocation8], 1 }
 0xb33   :  { %1507 = vsyncpa [#allocation6], 1 }
 0xb34   :  { %1509 = vsyncpa [#allocation6 + $0x1], 1 }

</bundles_post_ra>
